<compile_context>
chip_gen: v6e
topology: v6e:2x2x1
jax: 0.10.0
libtpu: 0.0.40
codegen_flags: <defaults>
</compile_context>

<pallas_src>
import jax
import jax.numpy as jnp
from jax.experimental import pallas as pl
from jax.experimental.pallas import tpu as pltpu

_LN_EPS = 1e-5
_INV_SQRT2 = 0.7071067811865476

_PARAM_ORDER = ("g1", "bt1", "w1", "b1", "w2", "b2", "g2", "bt2", "w3t", "b3", "w4t", "b4")


def _gelu(v, approx):
    if approx:
        # tanh approximation -> EUP (separate bundle slot, essentially free vs. VALU erf poly).
        return jax.nn.gelu(v, approximate=True)
    # PyTorch nn.GELU() default = exact erf formulation (numerical parity).
    return 0.5 * v * (1.0 + jax.lax.erf(v * _INV_SQRT2))


def _layernorm(v, gamma, beta):
    # Two-pass centered variance (robust to large means); cross-lane reductions go to the XLU.
    mu = jnp.mean(v, axis=-1, keepdims=True)
    c = v - mu
    var = jnp.mean(c * c, axis=-1, keepdims=True)
    return c * jax.lax.rsqrt(var + _LN_EPS) * gamma + beta


def _make_kernel(Bt, N, D, pm, cm, ck, approx_gelu):
    n_chunks = cm // ck
    bf16 = jnp.bfloat16
    f32 = jnp.float32

    def kernel(x_ref,
               g1_ref, bt1_ref,            # norm1 weight / bias          (1, D)      f32
               w1_ref, b1_ref,             # patch fc1: (pm, N) bf16, (1, pm, D) f32 (lane-dense)
               w2_ref, b2_ref,             # patch fc2: (N, pm) bf16, (1, N, D)  f32 (lane-dense)
               g2_ref, bt2_ref,            # norm2 weight / bias          (1, D)      f32
               w3t_ref, b3_ref,            # channel fc1: (D, cm) bf16, (1, cm) f32
               w4t_ref, b4_ref,            # channel fc2: (cm, D) bf16, (1, D)  f32
               o_ref):
        x = x_ref[...].astype(f32)                                      # (Bt, N, D)

        # ---- norm1 + patch mixer (mixes along N within each batch element) ----
        xn = _layernorm(x.reshape(Bt * N, D), g1_ref[...], bt1_ref[...])
        xb = xn.reshape(Bt, N, D).astype(bf16)
        w1b = jnp.broadcast_to(w1_ref[...], (Bt, pm, N))
        h = jnp.einsum("bpn,bnd->bpd", w1b, xb,
                       preferred_element_type=f32) + b1_ref[...]        # (Bt, pm, D)
        h = _gelu(h, approx_gelu)
        w2b = jnp.broadcast_to(w2_ref[...], (Bt, N, pm))
        pm_out = jnp.einsum("bnp,bpd->bnd", w2b, h.astype(bf16),
                            preferred_element_type=f32) + b2_ref[...]   # (Bt, N, D)
        x = x + pm_out                                                  # residual in f32

        # ---- norm2 + channel mixer (cm tiled; keeps the hidden slab VMEM/vreg-friendly) ----
        xn2 = _layernorm(x.reshape(Bt * N, D), g2_ref[...], bt2_ref[...]).astype(bf16)
        acc = jnp.zeros((Bt * N, D), f32)
        for c in range(n_chunks):              # static unroll; n_chunks kept small by _pick_cm_chunk
            lo = c * ck
            h2 = jnp.dot(xn2, w3t_ref[:, pl.ds(lo, ck)],
                         preferred_element_type=f32) + b3_ref[:, pl.ds(lo, ck)]
            h2 = _gelu(h2, approx_gelu)
            acc = acc + jnp.dot(h2.astype(bf16), w4t_ref[pl.ds(lo, ck), :],
                                preferred_element_type=f32)
        cm_out = acc + b4_ref[...]                                      # (Bt*N, D)
        o_ref[...] = (x + cm_out.reshape(Bt, N, D)).astype(o_ref.dtype)

    return kernel


def _pick_block_batch(B, N, target_rows=512):
    """Largest Bt dividing B with Bt*N ~ target_rows, keeping >= 2 grid steps when B allows
    (so the 'parallel' axis can shard across the two TensorCores on v7x)."""
    bt = max(1, min(B, max(1, target_rows // max(N, 1))))
    while B % bt:
        bt -= 1
    if B // bt < 2 and B >= 2:
        bt = max(1, B // 2)
        while B % bt:
            bt -= 1
    return bt


def _pick_cm_chunk(cm, cap=2048):
    """Largest lane-aligned (multiple of 128) chunk <= cap that divides cm."""
    if cm <= cap:
        return cm
    ck = (cap // 128) * 128
    while ck >= 128:
        if cm % ck == 0:
            return ck
        ck -= 128
    return cm   # no lane-aligned divisor; fall back to a single chunk


def _vmem_capacity_bytes():
    try:
        info = pltpu.get_tpu_info()
        for name in ("vmem_capacity_bytes", "vmem_size_bytes", "vmem_bytes"):
            cap = getattr(info, name, None)
            if cap:
                return int(cap)
    except Exception:
        pass
    return 128 << 20     # conservative default (v5e/v6e class)


def mixer_mlp(x, params, *, block_batch=None, cm_chunk_cap=2048,
              approx_gelu=False, out_dtype=None):
    """x: (B, N, D).  params: dict of pre-arranged weights (see init_params)."""
    B, N, D = x.shape
    pm = params["w1"].shape[0]
    cm = params["w3t"].shape[1]
    out_dtype = jnp.dtype(out_dtype) if out_dtype is not None else x.dtype

    Bt = block_batch if block_batch is not None else _pick_block_batch(B, N)
    assert B % Bt == 0, "block_batch must divide the batch dim"
    grid_b = B // Bt
    ck = _pick_cm_chunk(cm, cm_chunk_cap)

    weights = [params[k] for k in _PARAM_ORDER]

    # Grid-invariant operands: single-buffered (double-buffering a constant only wastes VMEM).
    def resident(a):
        nd = a.ndim
        return pl.BlockSpec(a.shape, lambda b, _nd=nd: (0,) * _nd,
                            pipeline_mode=pl.Buffered(1))

    x_kwargs = {}
    n_in_bufs = 2
    if grid_b >= 4:
        # x is the only moving DMA once weights are resident; deeper buffering hides HBM latency.
        x_kwargs["pipeline_mode"] = pl.Buffered(3)
        n_in_bufs = 3
    in_specs = ([pl.BlockSpec((Bt, N, D), lambda b: (b, 0, 0), **x_kwargs)]
                + [resident(a) for a in weights])

    # ---- VMEM budget: per-generation cap (v7x: 64 MiB/TC) with ~20% headroom ----
    weight_bytes = sum(int(a.size) * a.dtype.itemsize for a in weights)
    x_tile_bytes = Bt * N * D * x.dtype.itemsize
    o_tile_bytes = Bt * N * D * jnp.dtype(out_dtype).itemsize
    interm_bytes = (4 * (4 * Bt * N * D + 2 * Bt * pm * D + 2 * Bt * N * ck)
                    + 2 * (2 * Bt * N * D + Bt * N * ck))
    needed = (n_in_bufs * x_tile_bytes + 2 * o_tile_bytes + weight_bytes
              + interm_bytes + (4 << 20))
    vmem_limit = int(min(max(needed, 8 << 20), int(0.8 * _vmem_capacity_bytes())))

    flops = B * (4 * pm * N * D + 4 * N * D * cm)                # four matmuls
    transcendentals = B * (pm * D + N * cm)                      # erf/tanh per GELU element
    bytes_accessed = (B * N * D * (x.dtype.itemsize + jnp.dtype(out_dtype).itemsize)
                      + weight_bytes)

    kernel = _make_kernel(Bt, N, D, pm, cm, ck, approx_gelu)
    return pl.pallas_call(
        kernel,
        out_shape=jax.ShapeDtypeStruct((B, N, D), out_dtype),
        grid_spec=pltpu.PrefetchScalarGridSpec(
            num_scalar_prefetch=0,
            grid=(grid_b,),
            in_specs=in_specs,
            out_specs=pl.BlockSpec((Bt, N, D), lambda b: (b, 0, 0)),
        ),
        compiler_params=pltpu.CompilerParams(
            dimension_semantics=("parallel",),
            vmem_limit_bytes=vmem_limit),
        cost_estimate=pl.CostEstimate(
            flops=int(flops),
            transcendentals=int(transcendentals),
            bytes_accessed=int(bytes_accessed)),
    )(x, *weights)


def init_params(key, num_patches, embed_dims, patch_expansion, channel_expansion):
    """Deterministic synthetic parameters matching the nn.Module's shapes.
    nn.Linear weights are (out, in) in PyTorch; channel-mixer weights are stored pre-transposed
    ((in, out)) so the kernel does x @ W without a transpose.  pm is zero-padded to a sublane
    multiple (padded rows/cols are zero -> identical math).  Matmul weights are bf16 (MXU-native);
    LayerNorm params and biases stay f32.  Patch-mixer biases are stored lane-dense: (1, pm, D)
    and (1, N, D)."""
    pm = int(patch_expansion * num_patches)
    cm = int(channel_expansion * embed_dims)
    pm_pad = max(8, ((pm + 7) // 8) * 8)
    ks = jax.random.split(key, 8)
    s = 0.1
    bf16 = jnp.bfloat16
    f32 = jnp.float32

    w1 = jnp.zeros((pm_pad, num_patches), f32).at[:pm].set(
        s * jax.random.normal(ks[0], (pm, num_patches), f32))
    b1 = jnp.zeros((pm_pad,), f32).at[:pm].set(
        s * jax.random.normal(ks[1], (pm,), f32))
    w2 = jnp.zeros((num_patches, pm_pad), f32).at[:, :pm].set(
        s * jax.random.normal(ks[2], (num_patches, pm), f32))
    b2 = s * jax.random.normal(ks[3], (num_patches,), f32)

    return {
        # LayerNorm params (affine), (1, D) for clean broadcasting
        "g1":  jnp.ones((1, embed_dims), f32),
        "bt1": jnp.zeros((1, embed_dims), f32),
        "g2":  jnp.ones((1, embed_dims), f32),
        "bt2": jnp.zeros((1, embed_dims), f32),
        # patch mixer: Linear(N -> pm), Linear(pm -> N); biases pre-broadcast across D (lane-dense)
        "w1": w1.astype(bf16),
        "b1": jnp.tile(b1[None, :, None], (1, 1, embed_dims)),
        "w2": w2.astype(bf16),
        "b2": jnp.tile(b2[None, :, None], (1, 1, embed_dims)),
        # channel mixer: Linear(D -> cm), Linear(cm -> D), stored transposed
        "w3t": (s * jax.random.normal(ks[4], (embed_dims, cm), f32)).astype(bf16),
        "b3":  s * jax.random.normal(ks[5], (1, cm), f32),
        "w4t": (s * jax.random.normal(ks[6], (cm, embed_dims), f32)).astype(bf16),
        "b4":  s * jax.random.normal(ks[7], (1, embed_dims), f32),
    }


def reference_mlp(x, p):
    """Pure-JAX f32 reference reproducing the PyTorch forward exactly
    (weights up-cast to f32 so the only kernel delta is bf16 matmul rounding)."""
    def ln(v, g, b):
        mu = jnp.mean(v, axis=-1, keepdims=True)
        var = jnp.mean((v - mu) ** 2, axis=-1, keepdims=True)
        return (v - mu) * jax.lax.rsqrt(var + _LN_EPS) * g + b

    def gelu(v):
        return 0.5 * v * (1.0 + jax.lax.erf(v * _INV_SQRT2))

    f32 = lambda a: a.astype(jnp.float32)
    b1v = p["b1"][0, :, 0]                       # (pm_pad,)
    b2v = p["b2"][0, :, 0]                       # (N,)
    # patch mixer on norm1(x).transpose(1,2): (B, D, N)
    y = jnp.swapaxes(ln(x, p["g1"], p["bt1"]), 1, 2)
    y = gelu(y @ f32(p["w1"]).T + b1v) @ f32(p["w2"]).T + b2v
    x = x + jnp.swapaxes(y, 1, 2)
    # channel mixer on norm2(x)
    z = ln(x, p["g2"], p["bt2"])
    z = gelu(z @ f32(p["w3t"]) + p["b3"]) @ f32(p["w4t"]) + p["b4"]
    return x + z


if __name__ == "__main__":
    # Small but lane-dense demo shapes: D, cm multiples of 128; N multiple of 8.
    B, N, D = 8, 8, 128                              # batch, num_patches, embed_dims
    patch_expansion, channel_expansion = 0.5, 4.0    # pm = 4 (padded to 8), cm = 512

    key = jax.random.PRNGKey(0)
    kx, kp = jax.random.split(key)
    x = jax.random.normal(kx, (B, N, D), jnp.float32)
    params = init_params(kp, N, D, patch_expansion, channel_expansion)

    out = mixer_mlp(x, params)                       # Bt auto -> 4, grid=(2,) (megacore-friendly)
    out = jax.block_until_ready(out)

    ref = reference_mlp(x, params)
    assert out.shape == (B, N, D)
    # bf16 matmul inputs with f32 accumulation -> relaxed tolerance vs. all-f32 reference.
    assert jnp.allclose(out, ref, atol=3e-2, rtol=3e-2), "mismatch vs reference"

    print("KERNEL_OK")
</pallas_src>

<mosaic_0001>
module attributes {stable_mosaic.version = 11 : i64} {
  func.func @kernel(%arg0: i32, %arg1: memref<4x8x128xf32, #tpu.memory_space<vmem>>, %arg2: memref<1x128xf32, #tpu.memory_space<vmem>>, %arg3: memref<1x128xf32, #tpu.memory_space<vmem>>, %arg4: memref<8x8xbf16, #tpu.memory_space<vmem>>, %arg5: memref<1x8x128xf32, #tpu.memory_space<vmem>>, %arg6: memref<8x8xbf16, #tpu.memory_space<vmem>>, %arg7: memref<1x8x128xf32, #tpu.memory_space<vmem>>, %arg8: memref<1x128xf32, #tpu.memory_space<vmem>>, %arg9: memref<1x128xf32, #tpu.memory_space<vmem>>, %arg10: memref<128x512xbf16, #tpu.memory_space<vmem>>, %arg11: memref<1x512xf32, #tpu.memory_space<vmem>>, %arg12: memref<512x128xbf16, #tpu.memory_space<vmem>>, %arg13: memref<1x128xf32, #tpu.memory_space<vmem>>, %arg14: memref<4x8x128xf32, #tpu.memory_space<vmem>>) attributes {dimension_semantics = [#tpu.dimension_semantics<parallel>], iteration_bounds = array<i64: 2>, scalar_prefetch = 0 : i64, scratch_operands = 0 : i64, tpu.core_type = #tpu.core_type<tc>, window_params = [{transform_indices = @transform_0, window_bounds = array<i64: 4, 8, 128>}, {pipeline_mode = #tpu.pipeline_mode<synchronous>, transform_indices = @transform_1, window_bounds = array<i64: 1, 128>}, {pipeline_mode = #tpu.pipeline_mode<synchronous>, transform_indices = @transform_2, window_bounds = array<i64: 1, 128>}, {pipeline_mode = #tpu.pipeline_mode<synchronous>, transform_indices = @transform_3, window_bounds = array<i64: 8, 8>}, {pipeline_mode = #tpu.pipeline_mode<synchronous>, transform_indices = @transform_4, window_bounds = array<i64: 1, 8, 128>}, {pipeline_mode = #tpu.pipeline_mode<synchronous>, transform_indices = @transform_5, window_bounds = array<i64: 8, 8>}, {pipeline_mode = #tpu.pipeline_mode<synchronous>, transform_indices = @transform_6, window_bounds = array<i64: 1, 8, 128>}, {pipeline_mode = #tpu.pipeline_mode<synchronous>, transform_indices = @transform_7, window_bounds = array<i64: 1, 128>}, {pipeline_mode = #tpu.pipeline_mode<synchronous>, transform_indices = @transform_8, window_bounds = array<i64: 1, 128>}, {pipeline_mode = #tpu.pipeline_mode<synchronous>, transform_indices = @transform_9, window_bounds = array<i64: 128, 512>}, {pipeline_mode = #tpu.pipeline_mode<synchronous>, transform_indices = @transform_10, window_bounds = array<i64: 1, 512>}, {pipeline_mode = #tpu.pipeline_mode<synchronous>, transform_indices = @transform_11, window_bounds = array<i64: 512, 128>}, {pipeline_mode = #tpu.pipeline_mode<synchronous>, transform_indices = @transform_12, window_bounds = array<i64: 1, 128>}, {transform_indices = @transform_13, window_bounds = array<i64: 4, 8, 128>}]} {
    %c0 = arith.constant 0 : index
    %c0_0 = arith.constant 0 : index
    %c0_1 = arith.constant 0 : index
    %0 = vector.load %arg1[%c0, %c0_0, %c0_1] : memref<4x8x128xf32, #tpu.memory_space<vmem>>, vector<4x8x128xf32>
    %1 = vector.shape_cast %0 : vector<4x8x128xf32> to vector<32x128xf32>
    %c0_2 = arith.constant 0 : index
    %c0_3 = arith.constant 0 : index
    %2 = vector.load %arg2[%c0_2, %c0_3] : memref<1x128xf32, #tpu.memory_space<vmem>>, vector<1x128xf32>
    %c0_4 = arith.constant 0 : index
    %c0_5 = arith.constant 0 : index
    %3 = vector.load %arg3[%c0_4, %c0_5] : memref<1x128xf32, #tpu.memory_space<vmem>>, vector<1x128xf32>
    %cst = arith.constant dense<0.000000e+00> : vector<32xf32>
    %4 = vector.multi_reduction <add>, %1, %cst [1] : vector<32x128xf32> to vector<32xf32>
    %5 = vector.shape_cast %4 : vector<32xf32> to vector<32x1xf32>
    %cst_6 = arith.constant 1.280000e+02 : f32
    %6 = vector.broadcast %cst_6 : f32 to vector<32x1xf32>
    %7 = arith.divf %5, %6 : vector<32x1xf32>
    %8 = vector.broadcast %7 : vector<32x1xf32> to vector<32x128xf32>
    %9 = arith.subf %1, %8 : vector<32x128xf32>
    %10 = arith.mulf %9, %9 : vector<32x128xf32>
    %cst_7 = arith.constant dense<0.000000e+00> : vector<32xf32>
    %11 = vector.multi_reduction <add>, %10, %cst_7 [1] : vector<32x128xf32> to vector<32xf32>
    %12 = vector.shape_cast %11 : vector<32xf32> to vector<32x1xf32>
    %cst_8 = arith.constant 1.280000e+02 : f32
    %13 = vector.broadcast %cst_8 : f32 to vector<32x1xf32>
    %14 = arith.divf %12, %13 : vector<32x1xf32>
    %cst_9 = arith.constant 9.99999974E-6 : f32
    %15 = vector.broadcast %cst_9 : f32 to vector<32x1xf32>
    %16 = arith.addf %14, %15 : vector<32x1xf32>
    %17 = math.rsqrt %16 : vector<32x1xf32>
    %18 = vector.broadcast %17 : vector<32x1xf32> to vector<32x128xf32>
    %19 = arith.mulf %9, %18 : vector<32x128xf32>
    %20 = vector.broadcast %2 : vector<1x128xf32> to vector<32x128xf32>
    %21 = arith.mulf %19, %20 : vector<32x128xf32>
    %22 = vector.broadcast %3 : vector<1x128xf32> to vector<32x128xf32>
    %23 = arith.addf %21, %22 : vector<32x128xf32>
    %24 = vector.shape_cast %23 : vector<32x128xf32> to vector<4x8x128xf32>
    %25 = arith.truncf %24 : vector<4x8x128xf32> to vector<4x8x128xbf16>
    %c0_10 = arith.constant 0 : index
    %c0_11 = arith.constant 0 : index
    %26 = vector.load %arg4[%c0_10, %c0_11] : memref<8x8xbf16, #tpu.memory_space<vmem>>, vector<8x8xbf16>
    %27 = vector.shape_cast %26 : vector<8x8xbf16> to vector<1x8x8xbf16>
    %28 = vector.broadcast %27 : vector<1x8x8xbf16> to vector<4x8x8xbf16>
    "tpu.trace_start"() <{level = 10 : i32, message = "bpn,bnd->bpd"}> : () -> ()
    %cst_12 = arith.constant dense<0.000000e+00> : vector<4x8x128xf32>
    %29 = tpu.matmul %28, %25, %cst_12 {dimension_numbers = #tpu.dot_dimension_numbers<[2], [1], [1], [2], [0, 0, 0, 1, 1, 2], [0], [0]>} : vector<4x8x8xbf16>, vector<4x8x128xbf16>, vector<4x8x128xf32> -> vector<4x8x128xf32>
    "tpu.trace_stop"() : () -> ()
    %c0_13 = arith.constant 0 : index
    %c0_14 = arith.constant 0 : index
    %c0_15 = arith.constant 0 : index
    %30 = vector.load %arg5[%c0_13, %c0_14, %c0_15] : memref<1x8x128xf32, #tpu.memory_space<vmem>>, vector<1x8x128xf32>
    %31 = vector.broadcast %30 : vector<1x8x128xf32> to vector<4x8x128xf32>
    %32 = arith.addf %29, %31 : vector<4x8x128xf32>
    %cst_16 = arith.constant 5.000000e-01 : f32
    %33 = vector.broadcast %cst_16 : f32 to vector<4x8x128xf32>
    %34 = arith.mulf %33, %32 : vector<4x8x128xf32>
    %cst_17 = arith.constant 0.707106769 : f32
    %35 = vector.broadcast %cst_17 : f32 to vector<4x8x128xf32>
    %36 = arith.mulf %32, %35 : vector<4x8x128xf32>
    %37 = math.erf %36 : vector<4x8x128xf32>
    %cst_18 = arith.constant 1.000000e+00 : f32
    %38 = vector.broadcast %cst_18 : f32 to vector<4x8x128xf32>
    %39 = arith.addf %38, %37 : vector<4x8x128xf32>
    %40 = arith.mulf %34, %39 : vector<4x8x128xf32>
    %c0_19 = arith.constant 0 : index
    %c0_20 = arith.constant 0 : index
    %41 = vector.load %arg6[%c0_19, %c0_20] : memref<8x8xbf16, #tpu.memory_space<vmem>>, vector<8x8xbf16>
    %42 = vector.shape_cast %41 : vector<8x8xbf16> to vector<1x8x8xbf16>
    %43 = vector.broadcast %42 : vector<1x8x8xbf16> to vector<4x8x8xbf16>
    %44 = arith.truncf %40 : vector<4x8x128xf32> to vector<4x8x128xbf16>
    "tpu.trace_start"() <{level = 10 : i32, message = "bnp,bpd->bnd"}> : () -> ()
    %cst_21 = arith.constant dense<0.000000e+00> : vector<4x8x128xf32>
    %45 = tpu.matmul %43, %44, %cst_21 {dimension_numbers = #tpu.dot_dimension_numbers<[2], [1], [1], [2], [0, 0, 0, 1, 1, 2], [0], [0]>} : vector<4x8x8xbf16>, vector<4x8x128xbf16>, vector<4x8x128xf32> -> vector<4x8x128xf32>
    "tpu.trace_stop"() : () -> ()
    %c0_22 = arith.constant 0 : index
    %c0_23 = arith.constant 0 : index
    %c0_24 = arith.constant 0 : index
    %46 = vector.load %arg7[%c0_22, %c0_23, %c0_24] : memref<1x8x128xf32, #tpu.memory_space<vmem>>, vector<1x8x128xf32>
    %47 = vector.broadcast %46 : vector<1x8x128xf32> to vector<4x8x128xf32>
    %48 = arith.addf %45, %47 : vector<4x8x128xf32>
    %49 = arith.addf %0, %48 : vector<4x8x128xf32>
    %50 = vector.shape_cast %49 : vector<4x8x128xf32> to vector<32x128xf32>
    %c0_25 = arith.constant 0 : index
    %c0_26 = arith.constant 0 : index
    %51 = vector.load %arg8[%c0_25, %c0_26] : memref<1x128xf32, #tpu.memory_space<vmem>>, vector<1x128xf32>
    %c0_27 = arith.constant 0 : index
    %c0_28 = arith.constant 0 : index
    %52 = vector.load %arg9[%c0_27, %c0_28] : memref<1x128xf32, #tpu.memory_space<vmem>>, vector<1x128xf32>
    %cst_29 = arith.constant dense<0.000000e+00> : vector<32xf32>
    %53 = vector.multi_reduction <add>, %50, %cst_29 [1] : vector<32x128xf32> to vector<32xf32>
    %54 = vector.shape_cast %53 : vector<32xf32> to vector<32x1xf32>
    %cst_30 = arith.constant 1.280000e+02 : f32
    %55 = vector.broadcast %cst_30 : f32 to vector<32x1xf32>
    %56 = arith.divf %54, %55 : vector<32x1xf32>
    %57 = vector.broadcast %56 : vector<32x1xf32> to vector<32x128xf32>
    %58 = arith.subf %50, %57 : vector<32x128xf32>
    %59 = arith.mulf %58, %58 : vector<32x128xf32>
    %cst_31 = arith.constant dense<0.000000e+00> : vector<32xf32>
    %60 = vector.multi_reduction <add>, %59, %cst_31 [1] : vector<32x128xf32> to vector<32xf32>
    %61 = vector.shape_cast %60 : vector<32xf32> to vector<32x1xf32>
    %cst_32 = arith.constant 1.280000e+02 : f32
    %62 = vector.broadcast %cst_32 : f32 to vector<32x1xf32>
    %63 = arith.divf %61, %62 : vector<32x1xf32>
    %cst_33 = arith.constant 9.99999974E-6 : f32
    %64 = vector.broadcast %cst_33 : f32 to vector<32x1xf32>
    %65 = arith.addf %63, %64 : vector<32x1xf32>
    %66 = math.rsqrt %65 : vector<32x1xf32>
    %67 = vector.broadcast %66 : vector<32x1xf32> to vector<32x128xf32>
    %68 = arith.mulf %58, %67 : vector<32x128xf32>
    %69 = vector.broadcast %51 : vector<1x128xf32> to vector<32x128xf32>
    %70 = arith.mulf %68, %69 : vector<32x128xf32>
    %71 = vector.broadcast %52 : vector<1x128xf32> to vector<32x128xf32>
    %72 = arith.addf %70, %71 : vector<32x128xf32>
    %73 = arith.truncf %72 : vector<32x128xf32> to vector<32x128xbf16>
    %cst_34 = arith.constant 0.000000e+00 : f32
    %74 = vector.broadcast %cst_34 : f32 to vector<32x128xf32>
    %c0_35 = arith.constant 0 : index
    %c0_36 = arith.constant 0 : index
    %75 = vector.load %arg10[%c0_35, %c0_36] : memref<128x512xbf16, #tpu.memory_space<vmem>>, vector<128x512xbf16>
    %cst_37 = arith.constant dense<0.000000e+00> : vector<32x512xf32>
    %76 = tpu.matmul %73, %75, %cst_37 {dimension_numbers = #tpu.dot_dimension_numbers<[1], [0], [0], [1], [0, 0, 1, 1], [], []>} : vector<32x128xbf16>, vector<128x512xbf16>, vector<32x512xf32> -> vector<32x512xf32>
    %c0_38 = arith.constant 0 : index
    %c0_39 = arith.constant 0 : index
    %77 = vector.load %arg11[%c0_38, %c0_39] : memref<1x512xf32, #tpu.memory_space<vmem>>, vector<1x512xf32>
    %78 = vector.broadcast %77 : vector<1x512xf32> to vector<32x512xf32>
    %79 = arith.addf %76, %78 : vector<32x512xf32>
    %cst_40 = arith.constant 5.000000e-01 : f32
    %80 = vector.broadcast %cst_40 : f32 to vector<32x512xf32>
    %81 = arith.mulf %80, %79 : vector<32x512xf32>
    %cst_41 = arith.constant 0.707106769 : f32
    %82 = vector.broadcast %cst_41 : f32 to vector<32x512xf32>
    %83 = arith.mulf %79, %82 : vector<32x512xf32>
    %84 = math.erf %83 : vector<32x512xf32>
    %cst_42 = arith.constant 1.000000e+00 : f32
    %85 = vector.broadcast %cst_42 : f32 to vector<32x512xf32>
    %86 = arith.addf %85, %84 : vector<32x512xf32>
    %87 = arith.mulf %81, %86 : vector<32x512xf32>
    %88 = arith.truncf %87 : vector<32x512xf32> to vector<32x512xbf16>
    %c0_43 = arith.constant 0 : index
    %c0_44 = arith.constant 0 : index
    %89 = vector.load %arg12[%c0_43, %c0_44] : memref<512x128xbf16, #tpu.memory_space<vmem>>, vector<512x128xbf16>
    %cst_45 = arith.constant dense<0.000000e+00> : vector<32x128xf32>
    %90 = tpu.matmul %88, %89, %cst_45 {dimension_numbers = #tpu.dot_dimension_numbers<[1], [0], [0], [1], [0, 0, 1, 1], [], []>} : vector<32x512xbf16>, vector<512x128xbf16>, vector<32x128xf32> -> vector<32x128xf32>
    %91 = arith.addf %74, %90 : vector<32x128xf32>
    %c0_46 = arith.constant 0 : index
    %c0_47 = arith.constant 0 : index
    %92 = vector.load %arg13[%c0_46, %c0_47] : memref<1x128xf32, #tpu.memory_space<vmem>>, vector<1x128xf32>
    %93 = vector.broadcast %92 : vector<1x128xf32> to vector<32x128xf32>
    %94 = arith.addf %91, %93 : vector<32x128xf32>
    %95 = vector.shape_cast %94 : vector<32x128xf32> to vector<4x8x128xf32>
    %96 = arith.addf %49, %95 : vector<4x8x128xf32>
    %c0_48 = arith.constant 0 : index
    %c0_49 = arith.constant 0 : index
    %c0_50 = arith.constant 0 : index
    %97 = vector.load %arg14[%c0_48, %c0_49, %c0_50] : memref<4x8x128xf32, #tpu.memory_space<vmem>>, vector<4x8x128xf32>
    tpu.vector_store %arg14[%c0_48, %c0_49, %c0_50], %96 {strides = array<i32>} : memref<4x8x128xf32, #tpu.memory_space<vmem>>, vector<4x8x128xf32>,
    return
  }
  func.func @transform_0(%arg0: i32) -> (i32, i32, i32) {
    %c0_i32 = arith.constant 0 : i32
    %c0_i32_0 = arith.constant 0 : i32
    %c0_i32_1 = arith.constant 0 : i32
    return %arg0, %c0_i32, %c0_i32_0 : i32, i32, i32
  }
  func.func @transform_1(%arg0: i32) -> (i32, i32) {
    %c0_i32 = arith.constant 0 : i32
    %c0_i32_0 = arith.constant 0 : i32
    %c0_i32_1 = arith.constant 0 : i32
    return %c0_i32, %c0_i32_0 : i32, i32
  }
  func.func @transform_2(%arg0: i32) -> (i32, i32) {
    %c0_i32 = arith.constant 0 : i32
    %c0_i32_0 = arith.constant 0 : i32
    %c0_i32_1 = arith.constant 0 : i32
    return %c0_i32, %c0_i32_0 : i32, i32
  }
  func.func @transform_3(%arg0: i32) -> (i32, i32) {
    %c0_i32 = arith.constant 0 : i32
    %c0_i32_0 = arith.constant 0 : i32
    %c0_i32_1 = arith.constant 0 : i32
    return %c0_i32, %c0_i32_0 : i32, i32
  }
  func.func @transform_4(%arg0: i32) -> (i32, i32, i32) {
    %c0_i32 = arith.constant 0 : i32
    %c0_i32_0 = arith.constant 0 : i32
    %c0_i32_1 = arith.constant 0 : i32
    %c0_i32_2 = arith.constant 0 : i32
    return %c0_i32, %c0_i32_0, %c0_i32_1 : i32, i32, i32
  }
  func.func @transform_5(%arg0: i32) -> (i32, i32) {
    %c0_i32 = arith.constant 0 : i32
    %c0_i32_0 = arith.constant 0 : i32
    %c0_i32_1 = arith.constant 0 : i32
    return %c0_i32, %c0_i32_0 : i32, i32
  }
  func.func @transform_6(%arg0: i32) -> (i32, i32, i32) {
    %c0_i32 = arith.constant 0 : i32
    %c0_i32_0 = arith.constant 0 : i32
    %c0_i32_1 = arith.constant 0 : i32
    %c0_i32_2 = arith.constant 0 : i32
    return %c0_i32, %c0_i32_0, %c0_i32_1 : i32, i32, i32
  }
  func.func @transform_7(%arg0: i32) -> (i32, i32) {
    %c0_i32 = arith.constant 0 : i32
    %c0_i32_0 = arith.constant 0 : i32
    %c0_i32_1 = arith.constant 0 : i32
    return %c0_i32, %c0_i32_0 : i32, i32
  }
  func.func @transform_8(%arg0: i32) -> (i32, i32) {
    %c0_i32 = arith.constant 0 : i32
    %c0_i32_0 = arith.constant 0 : i32
    %c0_i32_1 = arith.constant 0 : i32
    return %c0_i32, %c0_i32_0 : i32, i32
  }
  func.func @transform_9(%arg0: i32) -> (i32, i32) {
    %c0_i32 = arith.constant 0 : i32
    %c0_i32_0 = arith.constant 0 : i32
    %c0_i32_1 = arith.constant 0 : i32
    return %c0_i32, %c0_i32_0 : i32, i32
  }
  func.func @transform_10(%arg0: i32) -> (i32, i32) {
    %c0_i32 = arith.constant 0 : i32
    %c0_i32_0 = arith.constant 0 : i32
    %c0_i32_1 = arith.constant 0 : i32
    return %c0_i32, %c0_i32_0 : i32, i32
  }
  func.func @transform_11(%arg0: i32) -> (i32, i32) {
    %c0_i32 = arith.constant 0 : i32
    %c0_i32_0 = arith.constant 0 : i32
    %c0_i32_1 = arith.constant 0 : i32
    return %c0_i32, %c0_i32_0 : i32, i32
  }
  func.func @transform_12(%arg0: i32) -> (i32, i32) {
    %c0_i32 = arith.constant 0 : i32
    %c0_i32_0 = arith.constant 0 : i32
    %c0_i32_1 = arith.constant 0 : i32
    return %c0_i32, %c0_i32_0 : i32, i32
  }
  func.func @transform_13(%arg0: i32) -> (i32, i32, i32) {
    %c0_i32 = arith.constant 0 : i32
    %c0_i32_0 = arith.constant 0 : i32
    %c0_i32_1 = arith.constant 0 : i32
    return %arg0, %c0_i32, %c0_i32_0 : i32, i32, i32
  }
}

</mosaic_0001>

<bundles_post_ra>
// kernel: tpu_custom_call.1
= control target key start
LH: loop header
LB: loop body
LE: loop exit
PB: predicated region body
PF: predicated region fallthrough
CT: control target
= control target key end

     0   :  { %s3375_s0 = inlined_call_operand.hbm [shape: f32[8,8,128], index: 0, kind: input, shape index: {}]   ;;  %s3376_s1 = inlined_call_operand.hbm [shape: f32[1,128], index: 1, kind: input, shape index: {}]   ;;  %s3377_s2 = inlined_call_operand.hbm [shape: f32[1,128], index: 2, kind: input, shape index: {}]   ;;  %s3378_s3 = inlined_call_operand.hbm [shape: bf16[8,8], index: 3, kind: input, shape index: {}]   ;;  %s3379_s4 = inlined_call_operand.hbm [shape: f32[1,8,128], index: 4, kind: input, shape index: {}]   ;;  %s3380_s5 = inlined_call_operand.hbm [shape: bf16[8,8], index: 5, kind: input, shape index: {}]   ;;  %s3381_s6 = inlined_call_operand.vmem [shape: f32[1,8,128], index: 6, kind: input, shape index: {}]   ;;  %s3382_s7 = inlined_call_operand.hbm [shape: f32[1,128], index: 7, kind: input, shape index: {}]   ;;  %s3383_s8 = inlined_call_operand.vmem [shape: f32[1,128], index: 8, kind: input, shape index: {}]   ;;  %s3384_s9 = inlined_call_operand.hbm [shape: bf16[128,512], index: 9, kind: input, shape index: {}]   ;;  %s3385_s10 = inlined_call_operand.vmem [shape: f32[1,512], index: 10, kind: input, shape index: {}]   ;;  %s3386_s11 = inlined_call_operand.hbm [shape: bf16[512,128], index: 11, kind: input, shape index: {}]   ;;  %s3387_s12 = inlined_call_operand.vmem [shape: f32[1,128], index: 12, kind: input, shape index: {}]   ;;  %s3388_s13 = inlined_call_operand.hbm [shape: f32[8,8,128], index: 13, kind: output, shape index: {}]  }
   0x1   :  { %3393 = sst [smem:[#allocation24_spill]] %s3376_s1 }
   0x2   :  { %3394 = sst [smem:[#allocation25_spill]] %s3377_s2 }
   0x3   :  { %3395 = sst [smem:[#allocation26_spill]] %s3378_s3 }
   0x4   :  { %3396 = sst [smem:[#allocation27_spill]] %s3379_s4 }
   0x5   :  { %3397 = sst [smem:[#allocation28_spill]] %s3380_s5 }
   0x6   :  { %3398 = sst [smem:[#allocation29_spill]] %s3382_s7 }
   0x7   :  { %3399 = sst [smem:[#allocation30_spill]] %s3384_s9 }
   0x8   :  { %18 = vsyncpa [#allocation3], 0 }
   0x9   :  { %20 = vsyncpa [#allocation3 + $0x1], 0 }
   0xa   :  { %21 = vsyncpa [#allocation6], 0 }
   0xb   :  { %22 = vsyncpa [#allocation9], 0 }
   0xc   :  { %23 = vsyncpa [#allocation12], 0 }
   0xd   :  { %24 = vsyncpa [#allocation15], 0 }
   0xe   :  { %25 = vsyncpa [#allocation4], 0 }
   0xf   :  { %27 = vsyncpa [#allocation4 + $0x1], 0  ;;  %s2945_s25 = smov 0   ;;  %s2947_s26 = smov 0  }
  0x10   :  { %s2949_s27 = smov 0   ;;  %s2951_s28 = smov 0  }
  0x11 LB: > { %s2854_s29 = smov [#allocation5]   ;;  %s2966_s14 = sadd.s32 4294967295, %s2852_s28   ;;  %s2852_s28 = sphi %s2951_s28, %s3432_s28   ;;  %s2848_s27 = sphi %s2949_s27, %s3431_s27   ;;  %s2844_s26 = sphi %s2947_s26, %s3430_s26   ;;  %s2840_s25 = sphi %s2945_s25, %s3429_s25  }
  0x12   : > { %s355_s30 = sshll.u32 %s2854_s29, 4  ;;  %p2034_p0 = scmp.ge.s32.totalorder %s2852_s28, 1  ;;  %s356_s30 = int_to_ptr.vmem [resolvable:$true] %s355_s30 }
  0x13   : > { %p3389_p1 = scmp.eq.s32.totalorder %s2966_s14, 0  ;;  %p342_p2 = scmp.lt.s32.totalorder %s2852_s28, 3 }
  0x14   : > { %s2855_s16 = smov [#allocation8]   ;;  %s2856_s18 = smov [#allocation11]  }
  0x15   : > { %p2971_p3 = pnand %p2034_p0, %p342_p2  ;;  %s377_s17 = sshll.u32 %s2855_s16, 4  ;;  %s378_s17 = int_to_ptr.vmem [resolvable:$true] %s377_s17 }
  0x16   : > { %s399_s19 = sshll.u32 %s2856_s18, 4  ;;  %s2857_s21 = smov [#allocation14]   ;;  %s2984_s19 = int_to_ptr.vmem [resolvable:$true] %s399_s19 }
  0x17   : > { %s3400_s15 = scalar_select %p2971_p3, 1, 0 }
  0x18   : > { %p2298_p5 = pneg %p2971_p3  ;;  %s2986_s22 = sshll.u32 %s2857_s21, 4  ;;  %s427_s22 = int_to_ptr.vmem [resolvable:$true] %s2986_s22 }
  0x19   : > { %s2547_s24 = scalar_lea.vmem %s356_s30, 16  ;;  %s2554_s29 = scalar_lea.vmem %s356_s30, 32 }
  0x1a   : > { %p2980_p6 = pnand %p2298_p5, %p3389_p1  ;;  %p2548_p8 = scmp.ne.s32.totalorder %s356_s30, %s2547_s24 }
  0x1b   : > { %p2555_p11 = scmp.lt.s32.totalorder %s356_s30, %s356_s30  ;;  %p2556_p12 = scmp.lt.s32.totalorder %s2554_s29, %s2547_s24 }
  0x1c   : > { %p2990_p7 = pneg %p2980_p6 }
  0x1d   : > { %p2557_p13 = por %p2556_p12, %p2555_p11 }
  0x1e   : > { %p2550_p9 = pnand %p2548_p8, %p2990_p7 }
  0x20   : > { %p2551_p10 = pneg %p2550_p9 }
  0x22   : > { %p2558_p0 = pnand %p2557_p13, %p2551_p10 }
  0x24   : > { %2561 = shalt.err (!%p2558_p0)
}
  0x25   : > { %s3403_s1 = sld [smem:[#allocation24_spill]]  ;;  %s2573_s21 = scalar_lea.vmem %s378_s17, 64 }
  0x26   : > { %p2574_p2 = scmp.ne.s32.totalorder %s378_s17, %s2573_s21  ;;  %p2581_p8 = scmp.lt.s32.totalorder %s378_s17, %s378_s17 }
  0x27   : > { %p2582_p9 = scmp.lt.s32.totalorder %s2573_s21, %s2573_s21 }
  0x28   : > { %p2576_p5 = pnand %p2574_p2, %p2990_p7 }
  0x29   : > { %p2583_p1 = por %p2582_p9, %p2581_p8 }
  0x2a   : > { %p2577_p4 = pneg %p2576_p5 }
  0x2b   : > { %2301 = dma.hbm_to_vmem [thread:$0]  (!%p2980_p6), %s3403_s1, 16, %s356_s30, [#allocation6]  }
  0x2c   : > { %p2584_p3 = pnand %p2583_p1, %p2577_p4 }
  0x2e   : > { %2587 = shalt.err (!%p2584_p3)
}
  0x2f   : > { %s3404_s3 = sld [smem:[#allocation26_spill]]  ;;  %s2599_s30 = scalar_lea.vmem %s2984_s19, 64 }
  0x30   : > { %p2600_p10 = scmp.ne.s32.totalorder %s2984_s19, %s2599_s30  ;;  %p2607_p13 = scmp.lt.s32.totalorder %s2984_s19, %s2984_s19 }
  0x31   : > { %p2608_p0 = scmp.lt.s32.totalorder %s2599_s30, %s2599_s30 }
  0x32   : > { %p2602_p11 = pnand %p2600_p10, %p2990_p7 }
  0x33   : > { %p2609_p1 = por %p2608_p0, %p2607_p13 }
  0x34   : > { %p2603_p12 = pneg %p2602_p11 }
  0x35   : > { %2307 = dma.hbm_to_vmem [thread:$0]  (!%p2980_p6), %s3404_s3, 64, %s378_s17, [#allocation9]  }
  0x36   : > { %p2610_p3 = pnand %p2609_p1, %p2603_p12 }
  0x38   : > { %2613 = shalt.err (!%p2610_p3)
}
  0x39   : > { %s3405_s5 = sld [smem:[#allocation28_spill]]  ;;  %s2625_s17 = scalar_lea.vmem %s427_s22, 4096 }
  0x3a   : > { %p2626_p4 = scmp.ne.s32.totalorder %s427_s22, %s2625_s17  ;;  %p2633_p8 = scmp.lt.s32.totalorder %s427_s22, %s427_s22 }
  0x3b   : > { %p2634_p9 = scmp.lt.s32.totalorder %s2625_s17, %s2625_s17 }
  0x3c   : > { %p2628_p2 = pnand %p2626_p4, %p2990_p7 }
  0x3d   : > { %p2635_p10 = por %p2634_p9, %p2633_p8 }
  0x3e   : > { %p2629_p5 = pneg %p2628_p2 }
  0x3f   : > { %2313 = dma.hbm_to_vmem [thread:$0]  (!%p2980_p6), %s3405_s5, 64, %s2984_s19, [#allocation12]  }
  0x40   : > { %p2636_p11 = pnand %p2635_p10, %p2629_p5 }
  0x42   : > { %2639 = shalt.err (!%p2636_p11)
}
  0x43   : > { %s2858_s21 = smov 256   ;;  %s2859_s24 = smov 16  }
  0x44   : > { %s3406_s9 = sld [smem:[#allocation30_spill]]  ;;  %s2860_s19 = smov [#allocation7]  }
  0x45   : > { %s366_s16 = sshll.u32 %s2860_s19, 4  ;;  %s2861_s18 = smov [#allocation10]   ;;  %s367_s16 = int_to_ptr.vmem [resolvable:$true] %s366_s16 }
  0x46   : > { %s388_s1 = sshll.u32 %s2861_s18, 4  ;;  %s2651_s3 = scalar_lea.vmem %s367_s16, 16  ;;  %s389_s1 = int_to_ptr.vmem [resolvable:$true] %s388_s1 }
  0x47   : > { %p2652_p12 = scmp.ne.s32.totalorder %s367_s16, %s2651_s3  ;;  %s2658_s17 = scalar_lea.vmem %s367_s16, 32 }
  0x48   : > { %p2659_p1 = scmp.lt.s32.totalorder %s367_s16, %s367_s16  ;;  %p2660_p3 = scmp.lt.s32.totalorder %s2658_s17, %s2651_s3 }
  0x49   : > { %p2654_p13 = pnand %p2652_p12, %p2990_p7 }
  0x4a   : > { %2319 = dma.hbm_to_vmem [thread:$0]  (!%p2980_p6), %s3406_s9, 4096, %s427_s22, [#allocation15], %s2858_s21, %s2858_s21, %s2859_s24  }
  0x4b   : > { %p2655_p0 = pneg %p2654_p13  ;;  %p2661_p4 = por %p2660_p3, %p2659_p1 }
  0x4d   : > { %p2662_p2 = pnand %p2661_p4, %p2655_p0 }
  0x4f   : > { %2665 = shalt.err (!%p2662_p2)
}
  0x50   : > { %s3407_s2 = sld [smem:[#allocation25_spill]]  ;;  %s2677_s24 = scalar_lea.vmem %s389_s1, 128 }
  0x51   : > { %p2678_p5 = scmp.ne.s32.totalorder %s389_s1, %s2677_s24  ;;  %p2685_p10 = scmp.lt.s32.totalorder %s389_s1, %s389_s1 }
  0x52   : > { %p2686_p11 = scmp.lt.s32.totalorder %s2677_s24, %s2677_s24 }
  0x53   : > { %p2680_p8 = pnand %p2678_p5, %p2990_p7 }
  0x54   : > { %p2687_p12 = por %p2686_p11, %p2685_p10 }
  0x55   : > { %p2681_p9 = pneg %p2680_p8 }
  0x56   : > { %2304 = dma.hbm_to_vmem [thread:$0]  (!%p2980_p6), %s3407_s2, 16, %s367_s16, [#allocation6]  }
  0x57   : > { %p2688_p13 = pnand %p2687_p12, %p2681_p9 }
  0x59   : > { %2691 = shalt.err (!%p2688_p13)
}
  0x5a   : > { %s3408_s4 = sld [smem:[#allocation27_spill]]  ;;  %s2862_s30 = smov [#allocation13]  }
  0x5b   : > { %s413_s19 = sshll.u32 %s2862_s30, 4  ;;  %s2863_s16 = smov [#allocation16]   ;;  %s414_s19 = int_to_ptr.vmem [resolvable:$true] %s413_s19 }
  0x5c   : > { %s442_s18 = sshll.u32 %s2863_s16, 4  ;;  %s2703_s17 = scalar_lea.vmem %s414_s19, 16  ;;  %s443_s18 = int_to_ptr.vmem [resolvable:$true] %s442_s18 }
  0x5d   : > { %p2704_p0 = scmp.ne.s32.totalorder %s414_s19, %s2703_s17  ;;  %s2710_s22 = scalar_lea.vmem %s414_s19, 32 }
  0x5e   : > { %p2711_p4 = scmp.lt.s32.totalorder %s414_s19, %s414_s19  ;;  %p2712_p2 = scmp.lt.s32.totalorder %s2710_s22, %s2703_s17 }
  0x5f   : > { %p2706_p1 = pnand %p2704_p0, %p2990_p7 }
  0x60   : > { %2310 = dma.hbm_to_vmem [thread:$0]  (!%p2980_p6), %s3408_s4, 128, %s389_s1, [#allocation9]  }
  0x61   : > { %p2707_p3 = pneg %p2706_p1  ;;  %p2713_p5 = por %p2712_p2, %p2711_p4 }
  0x63   : > { %p2714_p8 = pnand %p2713_p5, %p2707_p3 }
  0x65   : > { %2717 = shalt.err (!%p2714_p8)
}
  0x66   : > { %s3409_s7 = sld [smem:[#allocation29_spill]]  ;;  %s2729_s24 = scalar_lea.vmem %s443_s18, 4096 }
  0x67   : > { %p2730_p9 = scmp.ne.s32.totalorder %s443_s18, %s2729_s24  ;;  %p2737_p12 = scmp.lt.s32.totalorder %s443_s18, %s443_s18 }
  0x68   : > { %p2738_p13 = scmp.lt.s32.totalorder %s2729_s24, %s2729_s24 }
  0x69   : > { %p2732_p10 = pnand %p2730_p9, %p2990_p7 }
  0x6a   : > { %p2739_p0 = por %p2738_p13, %p2737_p12 }
  0x6b   : > { %p2733_p11 = pneg %p2732_p10 }
  0x6c   : > { %2316 = dma.hbm_to_vmem [thread:$0]  (!%p2980_p6), %s3409_s7, 16, %s414_s19, [#allocation12]  }
  0x6d   : > { %p2740_p1 = pnand %p2739_p0, %p2733_p11 }
  0x6f   : > { %2743 = shalt.err (!%p2740_p1)
}
  0x70   : > { %s2864_s3 = smov 64   ;;  %s2865_s23 = smov 4  }
  0x71   : > { %2322 = dma.hbm_to_vmem [thread:$0]  (!%p2980_p6), %s3386_s11, 4096, %s443_s18, [#allocation15], %s2864_s3, %s2864_s3, %s2865_s23  }
  0x72   : > { %s2033_s19 = sadd.s32 4294967294, %s2852_s28   ;;  %s3058_s16 = sadd.s32 1, %s2852_s28  }
  0x73   : > { %s37_s17 = ssub.s32 %s2852_s28, %s3058_s16  ;;  %s40_s22 = sadd.s32 1, %s2848_s27 }
  0x74   : > { %p38_p7 = scmp.eq.s32.totalorder %s37_s17, 0  ;;  %p47_p3 = scmp.ne.s32.totalorder %s2848_s27, %s2844_s26 }
  0x75   : > { %p48_p4 = scmp.eq.s32.totalorder %s2852_s28, 0  ;;  %p53_p2 = scmp.ne.s32.totalorder %s2844_s26, %s2840_s25 }
  0x76   : > { %s3069_s1 = scalar_select %p38_p7, %s2848_s27, %s40_s22  }
  0x77   : > { %p3071_p5 = por %p48_p4, %p47_p3  ;;  %p3411_p8 = scmp.eq.s32.totalorder %s2966_s14, 0 }
  0x78   : > { %p329_p9 = scmp.eq.s32.totalorder %s2966_s14, 1  ;;  %p335_p10 = scmp.eq.s32.totalorder %s2033_s19, 1 }
  0x79   : > { %p3077_p6 = por %p3411_p8, %p53_p2  ;;  %p2339_p11 = scmp.lt.s32.totalorder %s2852_s28, 2 }
  0x7a   : > { %s459_s21 = sand.u32 1, %s2848_s27   ;;  %p3084_p12 = por %p329_p9, %p47_p3 }
  0x7b   : > { %s3412_s18 = scalar_select %p3077_p6, 1, 0 }
  0x7c   : > { %s3413_s24 = scalar_select %p3084_p12, 1, 0 }
  0x7d   : > { %p3088_p13 = por %p335_p10, %p53_p2  ;;  %s2044_s23 = sshll.u32 %s459_s21, 5 }
  0x7e   : > { %s2140_s29 = sshll.u32 %s2852_s28, 9  ;;  %s463_s19 = scalar_lea.vmem [#allocation2], %s2044_s23 }
  0x7f   : > { %s3414_s3 = scalar_select %p3088_p13, 1, 0 }
  0x80   : > { %s3096_s22 = scalar_lea.hbm %s3375_s0, %s2140_s29  ;;  %s470_s2 = sshll.u32 %s463_s19, 4  ;;  %s3098_s2 = int_to_ptr.vmem [resolvable:$true] %s470_s2 }
  0x81   : > { %p3102_p0 = pnand %p2339_p11, %p3071_p5  ;;  %s3106_s5 = scalar_lea.sflag [#allocation3], %s459_s21 }
  0x82   : > { %s2744_s7 = scalar_lea.hbm %s3096_s22, 512  ;;  %s2749_s23 = scalar_lea.hbm %s3375_s0, 1024 }
  0x83   : > { %p2745_p1 = scmp.ne.s32.totalorder %s3096_s22, %s2744_s7  ;;  %p2746_p7 = pneg %p3102_p0 }
  0x84   : > { %p2750_p2 = scmp.lt.s32.totalorder %s3096_s22, %s3375_s0  ;;  %p2751_p5 = scmp.lt.s32.totalorder %s2749_s23, %s2744_s7 }
  0x85   : > { %p2747_p3 = pnand %p2746_p7, %p2745_p1 }
  0x86   : > { %p2752_p8 = por %p2751_p5, %p2750_p2 }
  0x87   : > { %p2748_p4 = pneg %p2747_p3 }
  0x89   : > { %p2753_p9 = pnand %p2752_p8, %p2748_p4 }
  0x8b   : > { %2756 = shalt.err (!%p2753_p9)
}
  0x8c   : > { %s2757_s20 = scalar_lea.vmem %s3098_s2, 512  ;;  %s2866_s21 = smov [#allocation2]  }
  0x8d   : > { %p2758_p10 = scmp.ne.s32.totalorder %s3098_s2, %s2757_s20  ;;  %s2762_s9 = sshll.u32 %s2866_s21, 4  ;;  %s2763_s9 = int_to_ptr.vmem [resolvable:$false] %s2762_s9 }
  0x8e   : > { %s2764_s29 = scalar_lea.vmem %s2763_s9, 1024  ;;  %p2765_p3 = scmp.lt.s32.totalorder %s3098_s2, %s2763_s9 }
  0x8f   : > { %p2760_p11 = pnand %p2758_p10, %p2746_p7  ;;  %p2766_p13 = scmp.lt.s32.totalorder %s2764_s29, %s2757_s20 }
  0x91   : > { %p2761_p1 = pneg %p2760_p11  ;;  %p2767_p12 = por %p2766_p13, %p2765_p3 }
  0x93   : > { %p2768_p6 = pnand %p2767_p12, %p2761_p1 }
  0x95   : > { %2771 = shalt.err (!%p2768_p6)
}
  0x96   : > { %s2867_s7 = smov 128   ;;  %s2868_s30 = smov 8  }
  0x97   : > { %2326 = dma.hbm_to_vmem [thread:$0]  (!%p3102_p0), %s3096_s22, 512, %s3098_s2, %s3106_s5, %s2867_s7, %s2867_s7, %s2868_s30  }
  0x98   : > { %p3416_p7 = scmp.ne.s32.totalorder %s3400_s15, 0 }
  0x99   : > { %s3130_s23 = sand.u32 (!%p3416_p7), 1, %s2844_s26   ;;  %p3417_p6 = scmp.ne.s32.totalorder (!%p3416_p7), %s3412_s18, 0 }
  0x9a   : > { %482 = sbr.rel (%p3416_p7) target bundleno = 1668 (0x684), region = 72  ;;  %s2048_s9 = sshll.u32 (!%p3416_p7), %s3130_s23, 5 }
  0x9b   : > { %s485_s17 = scalar_lea.sflag (!%p3416_p7), [#allocation3], %s3130_s23  ;;  %s488_s19 = scalar_lea.vmem (!%p3416_p7), [#allocation2], %s2048_s9 }
  0x9f   : > { %2815 = dma.done.wait (%p3417_p6), %s485_s17, 512  }
  0xa0   : > { %2817 = vsyncadd (%p3417_p6), %s485_s17, 4294966784  ;;  %p3418_p12 = scmp.eq.s32.totalorder %s2966_s14, 0 }
  0xa2   : > { %2819 = dma.done.wait (%p3418_p12), [#allocation6], 32   ;;  %p3419_p13 = pmov %p3418_p12 }
  0xa3   : > { %p3420_p0 = pmov %p3418_p12 }
  0xa4   : > { %2821 = vsyncadd (%p3419_p13), [#allocation6], 4294967264 }
  0xa5   : > { %2823 = dma.done.wait (%p3420_p0), [#allocation9], 192   ;;  %p3421_p4 = pmov %p3420_p0 }
  0xa6   : > { %p3422_p2 = pmov %p3420_p0 }
  0xa7   : > { %2825 = vsyncadd (%p3421_p4), [#allocation9], 4294967104 }
  0xa8   : > { %2827 = dma.done.wait (%p3422_p2), [#allocation12], 80   ;;  %p3423_p5 = pmov %p3420_p0 }
  0xa9   : > { %p3424_p8 = pmov %p3420_p0 }
  0xaa   : > { %2829 = vsyncadd (%p3423_p5), [#allocation12], 4294967216 }
  0xab   : > { %2831 = dma.done.wait (%p3424_p8), [#allocation15], 8192   ;;  %p3425_p9 = pmov %p3420_p0 }
  0xac   : > { %v3156_v0 = vld [vmem:[%s488_s19] sm:$0xff]  ;;  %v3158_v1 = vld [vmem:[%s488_s19 + $0x10] sm:$0xff]  ;;  %v3160_v2 = vld [vmem:[%s488_s19 + $0x8] sm:$0xff]  ;;  %v2869_v20 = vmov 0.0   ;;  %vm2870_vm0 = vmmov 0   ;;  %vm647_vm1 = vcmask 1043456  }
  0xad   : > { %2833 = vsyncadd (%p3425_p9), [#allocation15], 4294959104  ;;  %572 = vadd.xlane.f32.xlu0 %v3156_v0  ;;  %576 = vadd.xlane.f32.xlu1 %v3158_v1  ;;  %v3164_v3 = vld [vmem:[%s488_s19 + $0x18] sm:$0xff]  ;;  %v2058_v34 = vld [vmem:[#allocation5] ss:$0 sm:$0xff]  ;;  %vm643_vm2 = vcmask 64512  }
  0xae   : > { %2214 = vmatprep.subr.bf16.mxu0 %v2869_v20  ;;  %2220 = vmatprep.subr.bf16.mxu1 %v2869_v20  ;;  %v2059_v36 = vld [vmem:[#allocation7] ss:$0 sm:$0xff]  ;;  %v641_v50 = vld [vmem:[#allocation8] sm:$0xf]  ;;  %v642_v60 = vld [vmem:[#allocation10] sm:$0xff]  ;;  %s562_s29 = scalar_lea.vmem [#allocation17], %s2048_s9 }
  0xaf   : > { %2216 = vmatprep.mubr.msk.bf16.mxu0 %vm2870_vm0, %v2869_v20  ;;  %2222 = vmatprep.mubr.msk.bf16.mxu1 %vm2870_vm0, %v2869_v20  ;;  %s1884_s7 = sshll.u32 %s562_s29, 4  ;;  %s2141_s30 = sshll.u32 %s2966_s14, 9  ;;  %s3326_s7 = int_to_ptr.vmem [resolvable:$true] %s1884_s7 }
  0xb0   : > { %s3331_s19 = scalar_lea.hbm %s3388_s13, %s2141_s30  ;;  %s1871_s2 = scalar_lea.sflag [#allocation4], %s3130_s23 }
  0xb1   : > { %574 = vadd.xlane.f32.xlu0 %v3160_v2  ;;  %578 = vadd.xlane.f32.xlu1 %v3164_v3  ;;  %s2772_s4 = scalar_lea.vmem %s3326_s7, 512  ;;  %p3426_p11 = scmp.ne.s32.totalorder %s3413_s24, 0 }
  0xb2   : > { %p2773_p10 = scmp.ne.s32.totalorder %s3326_s7, %s2772_s4  ;;  %s2872_s14 = smov [#allocation17]  }
  0xb3   : > { %s2776_s5 = sshll.u32 %s2872_s14, 4  ;;  %s2777_s5 = int_to_ptr.vmem [resolvable:$false] %s2776_s5 }
  0xb4   : > { %p2774_p1 = pnand %p2773_p10, %p3426_p11  ;;  %s2778_s15 = scalar_lea.vmem %s2777_s5, 1024 }
  0xb5   : > { %p2779_p7 = scmp.lt.s32.totalorder %s3326_s7, %s2777_s5  ;;  %p2780_p6 = scmp.lt.s32.totalorder %s2778_s15, %s2772_s4 }
  0xb6   : > { %p2775_p3 = pneg %p2774_p1 }
  0xb7   : > { %p2781_p12 = por %p2780_p6, %p2779_p7 }
  0xb9   : > { %p2782_p13 = pnand %p2781_p12, %p2775_p3 }
 0x136   : > { %v573_v4 = vpop.xlane.xlu0 %572  ;;  %v577_v5 = vpop.xlane.xlu1 %576 }
 0x137   : > { %v581_v6 = vmul.f32 0.0078125, %v573_v4  ;;  %v583_v7 = vmul.f32 0.0078125, %v577_v5 }
 0x139   : > { %v585_v8 = vsub.f32 %v3156_v0, %v581_v6  ;;  %v587_v9 = vsub.f32 %v3158_v1, %v583_v7 }
 0x13a   : > { %v575_v10 = vpop.xlane.xlu0 %574  ;;  %v579_v11 = vpop.xlane.xlu1 %578 }
 0x13b   : > { %v582_v12 = vmul.f32 0.0078125, %v575_v10  ;;  %v589_v13 = vmul.f32 %v585_v8, %v585_v8  ;;  %v584_v14 = vmul.f32 0.0078125, %v579_v11  ;;  %v591_v17 = vmul.f32 %v587_v9, %v587_v9 }
 0x13d   : > { %v586_v15 = vsub.f32 %v3160_v2, %v582_v12  ;;  %593 = vadd.xlane.f32.xlu0 %v589_v13  ;;  %v588_v16 = vsub.f32 %v3164_v3, %v584_v14 }
 0x13f   : > { %v590_v18 = vmul.f32 %v586_v15, %v586_v15  ;;  %v592_v19 = vmul.f32 %v588_v16, %v588_v16 }
 0x141   : > { %597 = vadd.xlane.f32.xlu0 %v591_v17  ;;  %595 = vadd.xlane.f32.xlu1 %v590_v18 }
 0x145   : > { %599 = vadd.xlane.f32.xlu1 %v592_v19 }
 0x1c6   : > { %v594_v21 = vpop.xlane.xlu0 %593 }
 0x1c7   : > { %v601_v22 = vmul.f32 0.0078125, %v594_v21 }
 0x1c9   : > { %v605_v23 = vadd.f32 1e-05, %v601_v22 }
 0x1ca   : > { %v596_v24 = vpop.xlane.xlu1 %595  ;;  %v598_v25 = vpop.xlane.xlu0 %597 }
 0x1cb   : > { %2480 = vrsqrt.f32 %v605_v23  ;;  %v602_v26 = vmul.f32 0.0078125, %v596_v24  ;;  %v603_v27 = vmul.f32 0.0078125, %v598_v25 }
 0x1cd   : > { %v606_v28 = vadd.f32 1e-05, %v602_v26  ;;  %v607_v29 = vadd.f32 1e-05, %v603_v27 }
 0x1ce   : > { %v600_v30 = vpop.xlane.xlu1 %599 }
 0x1cf   : > { %2482 = vrsqrt.f32 %v606_v28  ;;  %v604_v31 = vmul.f32 0.0078125, %v600_v30 }
 0x1d0   : > { %2484 = vrsqrt.f32 %v607_v29 }
 0x1d1   : > { %v608_v32 = vadd.f32 1e-05, %v604_v31 }
 0x1d3   : > { %2486 = vrsqrt.f32 %v608_v32 }
 0x1d8   : > { %v2481_v33 = vpop.eup %2480 }
 0x1d9   : > { %v613_v35 = vmul.f32 %v2481_v33, %v585_v8 }
 0x1db   : > { %v623_v37 = vmul.f32 %v2058_v34, %v613_v35 }
 0x1dc   : > { %v2483_v38 = vpop.eup %2482 }
 0x1dd   : > { %v2485_v39 = vpop.eup %2484  ;;  %v633_v40 = vadd.f32 %v2059_v36, %v623_v37  ;;  %v614_v41 = vmul.f32 %v2483_v38, %v586_v15  ;;  %v840_v37 = vld [vmem:[#allocation11] sm:$0xf] }
 0x1de   : > { %v615_v42 = vmul.f32 %v2485_v39, %v587_v9 }
 0x1df   : > { %v637_v43 = vpack.c.bf16 %v633_v40, %v633_v40  ;;  %v624_v44 = vmul.f32 %v2058_v34, %v614_v41 }
 0x1e0   : > { %v2487_v45 = vpop.eup %2486  ;;  %v625_v46 = vmul.f32 %v2058_v34, %v615_v42 }
 0x1e1   : > { %v649_v47 = vsel %vm647_vm1, %v637_v43, 0  ;;  %v634_v48 = vadd.f32 %v2059_v36, %v624_v44  ;;  %v616_v49 = vmul.f32 %v2487_v45, %v588_v16 }
 0x1e2   : > { %2215 = vmatpush3.bf16.msra.mxu0 %v649_v47  ;;  %v635_v51 = vadd.f32 %v2059_v36, %v625_v46 }
 0x1e3   : > { %2226 = vmatprep.subr.bf16.mxu0 %v2869_v20  ;;  %v638_v52 = vpack.c.bf16 %v634_v48, %v634_v48  ;;  %v626_v53 = vmul.f32 %v2058_v34, %v616_v49 }
 0x1e4   : > { %v639_v54 = vpack.c.bf16 %v635_v51, %v635_v51  ;;  %v845_v51 = vld [vmem:[%s3381_s6] sm:$0xff] }
 0x1e5   : > { %2217 = vmatmul.mubr.msk.bf16.vlgmr.msra.gmra.mxu0 %vm643_vm2, %v641_v50  ;;  %v692_v55 = vsel %vm647_vm1, %v638_v52, 0  ;;  %v636_v56 = vadd.f32 %v2059_v36, %v626_v53 }
 0x1e6   : > { %2221 = vmatpush3.bf16.msra.mxu1 %v692_v55  ;;  %v735_v57 = vsel %vm647_vm1, %v639_v54, 0  ;;  %2228 = vmatprep.mubr.msk.bf16.mxu0 %vm2870_vm0, %v2869_v20 }
 0x1e7   : > { %2227 = vmatpush3.bf16.msra.mxu0 %v735_v57  ;;  %2232 = vmatprep.subr.bf16.mxu1 %v2869_v20  ;;  %v640_v58 = vpack.c.bf16 %v636_v56, %v636_v56 }
 0x1e8   : > { %2238 = vmatprep.subr.bf16.mxu0 %v2869_v20 }
 0x1e9   : > { %2223 = vmatmul.mubr.msk.bf16.vlgmr.msra.gmra.mxu1 %vm643_vm2, %v641_v50  ;;  %v778_v59 = vsel %vm647_vm1, %v640_v58, 0 }
 0x1ea   : > { %2233 = vmatpush3.bf16.msra.mxu1 %v778_v59  ;;  %2234 = vmatprep.mubr.msk.bf16.mxu1 %vm2870_vm0, %v2869_v20 }
 0x1eb   : > { %2244 = vmatprep.subr.bf16.mxu1 %v2869_v20 }
 0x1ed   : > { %2229 = vmatmul.mubr.msk.bf16.vlgmr.msra.gmra.mxu0 %vm643_vm2, %v641_v50 }
 0x1ee   : > { %2240 = vmatprep.mubr.msk.bf16.mxu0 %vm2870_vm0, %v2869_v20 }
 0x1f1   : > { %2235 = vmatmul.mubr.msk.bf16.vlgmr.msra.gmra.mxu1 %vm643_vm2, %v641_v50 }
 0x1f2   : > { %2246 = vmatprep.mubr.msk.bf16.mxu1 %vm2870_vm0, %v2869_v20 }
 0x2a5   : > { %v685_v61 = vpop.f32.mrf.mxu0 }
 0x2a6   : > { %v686_v62 = vadd.f32 %v685_v61, %v642_v60 }
 0x2a7   : > { %v2218_v63 = vpop.f32.mrf.mxu0 }
 0x2a8   : > { %v824_v4 = vmul.f32 0.70710677, %v686_v62  ;;  %v820_v27 = vmul.f32 0.5, %v686_v62 }
 0x2a9   : > { %v688_v5 = vpop.f32.mrf.mxu0  ;;  %v728_v6 = vpop.f32.mrf.mxu1 }
 0x2aa   : > { %2488 = verf.f32 %v824_v4  ;;  %v729_v7 = vadd.f32 %v728_v6, %v642_v60 }
 0x2ab   : > { %v2219_v8 = vpop.f32.mrf.mxu0  ;;  %v2224_v9 = vpop.f32.mrf.mxu1 }
 0x2ac   : > { %v825_v10 = vmul.f32 0.70710677, %v729_v7  ;;  %v821_v32 = vmul.f32 0.5, %v729_v7 }
 0x2ad   : > { %v731_v11 = vpop.f32.mrf.mxu1  ;;  %v771_v12 = vpop.f32.mrf.mxu0 }
 0x2ae   : > { %2490 = verf.f32 %v825_v10  ;;  %v772_v13 = vadd.f32 %v771_v12, %v642_v60 }
 0x2af   : > { %v2225_v14 = vpop.f32.mrf.mxu1  ;;  %v2230_v15 = vpop.f32.mrf.mxu0 }
 0x2b0   : > { %v826_v16 = vmul.f32 0.70710677, %v772_v13  ;;  %v822_v39 = vmul.f32 0.5, %v772_v13  ;;  %v2400_v13 = vld [vmem:[#allocation14 + $0xe0] ss:$16 sps:$4 sm:$0xff]  }
 0x2b1   : > { %v774_v17 = vpop.f32.mrf.mxu0  ;;  %v814_v18 = vpop.f32.mrf.mxu1  ;;  %v2402_v14 = vld [vmem:[#allocation14 + $0xe4] ss:$16 sps:$4 sm:$0xff]   ;;  %v2403_v15 = vld [vmem:[#allocation14 + $0xe8] ss:$16 sps:$4 sm:$0xff]  }
 0x2b2   : > { %2492 = verf.f32 %v826_v16  ;;  %v815_v19 = vadd.f32 %v814_v18, %v642_v60  ;;  %v2405_v16 = vld [vmem:[#allocation14 + $0xec] ss:$16 sps:$4 sm:$0xff]  }
 0x2b3   : > { %v2231_v21 = vpop.f32.mrf.mxu0  ;;  %v2236_v22 = vpop.f32.mrf.mxu1 }
 0x2b4   : > { %v827_v23 = vmul.f32 0.70710677, %v815_v19  ;;  %v823_v45 = vmul.f32 0.5, %v815_v19 }
 0x2b5   : > { %v817_v24 = vpop.f32.mrf.mxu1 }
 0x2b6   : > { %2494 = verf.f32 %v827_v23 }
 0x2b7   : > { %v2489_v25 = vpop.eup %2488  ;;  %v2237_v26 = vpop.f32.mrf.mxu1 }
 0x2b8   : > { %v832_v28 = vadd.f32 1.0, %v2489_v25 }
 0x2ba   : > { %v836_v29 = vmul.f32 %v832_v28, %v820_v27 }
 0x2bb   : > { %v2491_v30 = vpop.eup %2490 }
 0x2bc   : > { %v841_v31 = vpack.c.bf16 %v836_v29, %v836_v29  ;;  %v833_v33 = vadd.f32 1.0, %v2491_v30 }
 0x2be   : > { %v837_v34 = vmul.f32 %v833_v33, %v821_v32  ;;  %v850_v35 = vsel %vm647_vm1, %v841_v31, 0  ;;  %v2408_v32 = vld [vmem:[#allocation14 + $0xc4] ss:$16 sps:$4 sm:$0xff]   ;;  %v2411_v33 = vld [vmem:[#allocation14 + $0xcc] ss:$16 sps:$4 sm:$0xff]  }
 0x2bf   : > { %v2493_v36 = vpop.eup %2492  ;;  %2239 = vmatpush3.bf16.msra.mxu0 %v850_v35  ;;  %v2409_v35 = vld [vmem:[#allocation14 + $0xc8] ss:$16 sps:$4 sm:$0xff]  }
 0x2c0   : > { %v842_v38 = vpack.c.bf16 %v837_v34, %v837_v34  ;;  %v834_v40 = vadd.f32 1.0, %v2493_v36  ;;  %2250 = vmatprep.subr.bf16.mxu0 %v2869_v20  ;;  %v2406_v34 = vld [vmem:[#allocation14 + $0xc0] ss:$16 sps:$4 sm:$0xff]   ;;  %v2414_v36 = vld [vmem:[#allocation14 + $0xa4] ss:$16 sps:$4 sm:$0xff]  }
 0x2c2   : > { %v838_v41 = vmul.f32 %v834_v40, %v822_v39  ;;  %2241 = vmatmul.mubr.msk.bf16.vlgmr.msra.gmra.mxu0 %vm643_vm2, %v840_v37  ;;  %v893_v42 = vsel %vm647_vm1, %v842_v38, 0  ;;  %v2412_v38 = vld [vmem:[#allocation14 + $0xa0] ss:$16 sps:$4 sm:$0xff]   ;;  %v2415_v39 = vld [vmem:[#allocation14 + $0xa8] ss:$16 sps:$4 sm:$0xff]  }
 0x2c3   : > { %v2495_v43 = vpop.eup %2494  ;;  %2245 = vmatpush3.bf16.msra.mxu1 %v893_v42  ;;  %2252 = vmatprep.mubr.msk.bf16.mxu0 %vm2870_vm0, %v2869_v20  ;;  %v2420_v40 = vld [vmem:[#allocation14 + $0x84] ss:$16 sps:$4 sm:$0xff]   ;;  %v2418_v42 = vld [vmem:[#allocation14 + $0x80] ss:$16 sps:$4 sm:$0xff]  }
 0x2c4   : > { %v843_v44 = vpack.c.bf16 %v838_v41, %v838_v41  ;;  %v835_v46 = vadd.f32 1.0, %v2495_v43  ;;  %2256 = vmatprep.subr.bf16.mxu1 %v2869_v20  ;;  %v2423_v41 = vld [vmem:[#allocation14 + $0x8c] ss:$16 sps:$4 sm:$0xff]   ;;  %v2421_v43 = vld [vmem:[#allocation14 + $0x88] ss:$16 sps:$4 sm:$0xff]  }
 0x2c6   : > { %v839_v47 = vmul.f32 %v835_v46, %v823_v45  ;;  %2247 = vmatmul.mubr.msk.bf16.vlgmr.msra.gmra.mxu1 %vm643_vm2, %v840_v37  ;;  %v936_v48 = vsel %vm647_vm1, %v843_v44, 0  ;;  %v2426_v44 = vld [vmem:[#allocation14 + $0x64] ss:$16 sps:$4 sm:$0xff]   ;;  %v2429_v45 = vld [vmem:[#allocation14 + $0x6c] ss:$16 sps:$4 sm:$0xff]  }
 0x2c7   : > { %2251 = vmatpush3.bf16.msra.mxu0 %v936_v48  ;;  %2258 = vmatprep.mubr.msk.bf16.mxu1 %vm2870_vm0, %v2869_v20  ;;  %v2424_v46 = vld [vmem:[#allocation14 + $0x60] ss:$16 sps:$4 sm:$0xff]  }
 0x2c8   : > { %v844_v49 = vpack.c.bf16 %v839_v47, %v839_v47  ;;  %1307 = vmatprep.subr.bf16.mxu0 %v2402_v14  ;;  %v2427_v47 = vld [vmem:[#allocation14 + $0x68] ss:$16 sps:$4 sm:$0xff]   ;;  %v2430_v48 = vld [vmem:[#allocation14 + $0x40] ss:$16 sps:$4 sm:$0xff]  }
 0x2ca   : > { %2253 = vmatmul.mubr.msk.bf16.vlgmr.msra.gmra.mxu0 %vm643_vm2, %v840_v37  ;;  %v979_v50 = vsel %vm647_vm1, %v844_v49, 0  ;;  %v2432_v49 = vld [vmem:[#allocation14 + $0x44] ss:$16 sps:$4 sm:$0xff]  }
 0x2cb   : > { %2257 = vmatpush3.bf16.msra.mxu1 %v979_v50  ;;  %1308 = vmatpush1.bf16.msra.mxu0 %v2400_v13  ;;  %v2433_v50 = vld [vmem:[#allocation14 + $0x48] ss:$16 sps:$4 sm:$0xff]  }
 0x2cc   : > { %1360 = vmatprep.subr.bf16.mxu1 %v2405_v16  ;;  %1309 = vmatprep.subr.bf16.mxu0 %v2408_v32  ;;  %v2068_v16 = vld [vmem:[#allocation13] ss:$0 sm:$0xff] }
 0x2ce   : > { %2259 = vmatmul.mubr.msk.bf16.vlgmr.msra.gmra.mxu1 %vm643_vm2, %v840_v37  ;;  %v2417_v37 = vld [vmem:[#allocation14 + $0xac] ss:$16 sps:$4 sm:$0xff]  }
 0x2cf   : > { %1361 = vmatpush1.bf16.msra.mxu1 %v2403_v15  ;;  %1310 = vmatpush1.bf16.msra.mxu0 %v2406_v34 }
 0x2d0   : > { %1362 = vmatprep.subr.bf16.mxu1 %v2411_v33  ;;  %1311 = vmatprep.subr.bf16.mxu0 %v2414_v36  ;;  %v2449_v36 = vld [vmem:[#allocation16 + $0xf8] sm:$0xff]  }
 0x2d3   : > { %1363 = vmatpush1.bf16.msra.mxu1 %v2409_v35  ;;  %1312 = vmatpush1.bf16.msra.mxu0 %v2412_v38  ;;  %v2448_v35 = vld [vmem:[#allocation16 + $0x78] sm:$0xff]  }
 0x2d4   : > { %1364 = vmatprep.subr.bf16.mxu1 %v2417_v37  ;;  %1313 = vmatprep.subr.bf16.mxu0 %v2420_v40  ;;  %v2450_v37 = vld [vmem:[#allocation16 + $0x38] sm:$0xff]   ;;  %v2455_v40 = vld [vmem:[#allocation16 + $0xb0] sm:$0xff]  }
 0x2d5   : > { %v2451_v38 = vld [vmem:[#allocation16 + $0xb8] sm:$0xff]  }
 0x2d7   : > { %1365 = vmatpush1.bf16.msra.mxu1 %v2415_v39  ;;  %1314 = vmatpush1.bf16.msra.mxu0 %v2418_v42  ;;  %v2453_v39 = vld [vmem:[#allocation16 + $0xf0] sm:$0xff]   ;;  %v2457_v42 = vld [vmem:[#allocation16 + $0xe8] sm:$0xff]  }
 0x2d8   : > { %1366 = vmatprep.subr.bf16.mxu1 %v2423_v41  ;;  %1315 = vmatprep.subr.bf16.mxu0 %v2426_v44  ;;  %v2456_v41 = vld [vmem:[#allocation16 + $0x68] sm:$0xff]  }
 0x2d9   : > { %v2459_v44 = vld [vmem:[#allocation16 + $0xa8] sm:$0xff]  }
 0x2db   : > { %1367 = vmatpush1.bf16.msra.mxu1 %v2421_v43  ;;  %1316 = vmatpush1.bf16.msra.mxu0 %v2424_v46  ;;  %v2458_v43 = vld [vmem:[#allocation16 + $0x28] sm:$0xff]   ;;  %v2461_v46 = vld [vmem:[#allocation16 + $0xe0] sm:$0xff]  }
 0x2dc   : > { %1368 = vmatprep.subr.bf16.mxu1 %v2429_v45  ;;  %1317 = vmatprep.subr.bf16.mxu0 %v2432_v49  ;;  %v2460_v45 = vld [vmem:[#allocation16 + $0x60] sm:$0xff]   ;;  %v2464_v49 = vld [vmem:[#allocation16 + $0x58] sm:$0xff]  }
 0x2df   : > { %1369 = vmatpush1.bf16.msra.mxu1 %v2427_v47  ;;  %1318 = vmatpush1.bf16.msra.mxu0 %v2430_v48  ;;  %v2462_v47 = vld [vmem:[#allocation16 + $0x20] sm:$0xff]  }
 0x2e0   : > { %v2463_v48 = vld [vmem:[#allocation16 + $0xa0] sm:$0xff]  }
 0x382   : > { %v886_v52 = vpop.f32.mrf.mxu0 }
 0x383   : > { %v887_v53 = vadd.f32 %v886_v52, %v845_v51  ;;  %v2438_v52 = vld [vmem:[#allocation14 + $0x24] ss:$16 sps:$4 sm:$0xff]  }
 0x384   : > { %v2242_v54 = vpop.f32.mrf.mxu0  ;;  %1319 = vmatprep.subr.bf16.mxu0 %v2438_v52  ;;  %v2467_v52 = vld [vmem:[#allocation16 + $0x98] sm:$0xff]  }
 0x385   : > { %v3216_v55 = vadd.f32 %v887_v53, %v3156_v0  ;;  %v2441_v53 = vld [vmem:[#allocation14 + $0x2c] ss:$16 sps:$4 sm:$0xff]   ;;  %v2436_v54 = vld [vmem:[#allocation14 + $0x20] ss:$16 sps:$4 sm:$0xff]  }
 0x386   : > { %v889_v56 = vpop.f32.mrf.mxu0  ;;  %v929_v20 = vpop.f32.mrf.mxu1  ;;  %1320 = vmatpush1.bf16.msra.mxu0 %v2436_v54  ;;  %v2469_v54 = vld [vmem:[#allocation16 + $0xd0] sm:$0xff]  }
 0x387   : > { %v930_v57 = vadd.f32 %v929_v20, %v845_v51  ;;  %1027 = vadd.xlane.f32.xlu0 %v3216_v55  ;;  %v2439_v56 = vld [vmem:[#allocation14 + $0x28] ss:$16 sps:$4 sm:$0xff]   ;;  %v2444_v20 = vld [vmem:[#allocation14 + $0x4] ss:$16 sps:$4 sm:$0xff]  }
 0x388   : > { %v2243_v58 = vpop.f32.mrf.mxu0  ;;  %v2248_v59 = vpop.f32.mrf.mxu1  ;;  %1321 = vmatprep.subr.bf16.mxu0 %v2444_v20  ;;  %v2471_v20 = vld [vmem:[#allocation16 + $0x90] sm:$0xff]  }
 0x389   : > { %v3220_v60 = vadd.f32 %v930_v57, %v3160_v2  ;;  %v2447_v57 = vld [vmem:[#allocation14 + $0xc] ss:$16 sps:$4 sm:$0xff]   ;;  %v2871_v58 = vmov 0   ;;  %v2442_v59 = vld [vmem:[#allocation14] ss:$16 sps:$4 sm:$0xff]  }
 0x38a   : > { %v932_v61 = vpop.f32.mrf.mxu1  ;;  %v972_v62 = vpop.f32.mrf.mxu0  ;;  %1339 = vmatprep.mubr.bf16.mxu0 %v2871_v58  ;;  %1392 = vmatprep.mubr.bf16.mxu1 %v2871_v58 }
 0x38b   : > { %v973_v63 = vadd.f32 %v972_v62, %v845_v51  ;;  %1029 = vadd.xlane.f32.xlu1 %v3220_v60  ;;  %v2445_v61 = vld [vmem:[#allocation14 + $0x8] ss:$16 sps:$4 sm:$0xff]   ;;  %1322 = vmatpush1.bf16.msra.mxu0 %v2442_v59 }
 0x38c   : > { %v2249_v4 = vpop.f32.mrf.mxu1  ;;  %v2254_v5 = vpop.f32.mrf.mxu0  ;;  %2158 = vmatprep.subr.bf16.mxu0 %v2448_v35  ;;  %v2474_v59 = vld [vmem:[#allocation16 + $0x8] sm:$0xff]  }
 0x38d   : > { %v3224_v0 = vadd.f32 %v973_v63, %v3158_v1 }
 0x38e   : > { %v1015_v6 = vpop.f32.mrf.mxu1  ;;  %v975_v7 = vpop.f32.mrf.mxu0 }
 0x38f   : > { %v1016_v8 = vadd.f32 %v1015_v6, %v845_v51  ;;  %1031 = vadd.xlane.f32.xlu0 %v3224_v0  ;;  %v2435_v51 = vld [vmem:[#allocation14 + $0x4c] ss:$16 sps:$4 sm:$0xff]  }
 0x390   : > { %v2260_v9 = vpop.f32.mrf.mxu1  ;;  %v2255_v10 = vpop.f32.mrf.mxu0  ;;  %1370 = vmatprep.subr.bf16.mxu1 %v2435_v51  ;;  %v2466_v51 = vld [vmem:[#allocation16 + $0x18] sm:$0xff]  }
 0x391   : > { %v3228_v2 = vadd.f32 %v1016_v8, %v3164_v3  ;;  %1371 = vmatpush1.bf16.msra.mxu1 %v2433_v50  ;;  %v2465_v50 = vld [vmem:[#allocation16 + $0xd8] sm:$0xff]  }
 0x392   : > { %v1018_v11 = vpop.f32.mrf.mxu1  ;;  %1372 = vmatprep.subr.bf16.mxu1 %v2441_v53  ;;  %v2468_v53 = vld [vmem:[#allocation16 + $0x50] sm:$0xff]  }
 0x393   : > { %1033 = vadd.xlane.f32.xlu1 %v3228_v2 }
 0x394   : > { %v2261_v12 = vpop.f32.mrf.mxu1 }
 0x395   : > { %1373 = vmatpush1.bf16.msra.mxu1 %v2439_v56  ;;  %v2470_v56 = vld [vmem:[#allocation16 + $0x10] sm:$0xff]  }
 0x396   : > { %1374 = vmatprep.subr.bf16.mxu1 %v2447_v57  ;;  %v2472_v57 = vld [vmem:[#allocation16 + $0x48] sm:$0xff]  }
 0x399   : > { %1375 = vmatpush1.bf16.msra.mxu1 %v2445_v61  ;;  %v2475_v61 = vld [vmem:[#allocation16 + $0x88] sm:$0xff]  }
 0x39a   : > { %2186 = vmatprep.subr.bf16.mxu1 %v2449_v36 }
 0x410   : > { %v1028_v1 = vpop.xlane.xlu0 %1027 }
 0x411   : > { %v1035_v17 = vmul.f32 0.0078125, %v1028_v1 }
 0x413   : > { %v3232_v18 = vsub.f32 %v3216_v55, %v1035_v17 }
 0x414   : > { %v1030_v19 = vpop.xlane.xlu1 %1029 }
 0x415   : > { %v1036_v3 = vmul.f32 0.0078125, %v1030_v19  ;;  %v1043_v21 = vmul.f32 %v3232_v18, %v3232_v18 }
 0x417   : > { %v3237_v22 = vsub.f32 %v3220_v60, %v1036_v3  ;;  %1047 = vadd.xlane.f32.xlu0 %v1043_v21  ;;  %v2069_v3 = vld [vmem:[%s3383_s8] ss:$0 sm:$0xff] }
 0x418   : > { %v1032_v23 = vpop.xlane.xlu0 %1031 }
 0x419   : > { %v1037_v24 = vmul.f32 0.0078125, %v1032_v23  ;;  %v1044_v25 = vmul.f32 %v3237_v22, %v3237_v22 }
 0x41b   : > { %v3242_v26 = vsub.f32 %v3224_v0, %v1037_v24  ;;  %1049 = vadd.xlane.f32.xlu1 %v1044_v25 }
 0x41c   : > { %v1034_v27 = vpop.xlane.xlu1 %1033 }
 0x41d   : > { %v1038_v28 = vmul.f32 0.0078125, %v1034_v27  ;;  %v1045_v29 = vmul.f32 %v3242_v26, %v3242_v26 }
 0x41f   : > { %v3247_v30 = vsub.f32 %v3228_v2, %v1038_v28  ;;  %1051 = vadd.xlane.f32.xlu0 %v1045_v29 }
 0x421   : > { %v1046_v31 = vmul.f32 %v3247_v30, %v3247_v30 }
 0x423   : > { %1053 = vadd.xlane.f32.xlu1 %v1046_v31 }
 0x4a0   : > { %v1048_v62 = vpop.xlane.xlu0 %1047 }
 0x4a1   : > { %v1055_v63 = vmul.f32 0.0078125, %v1048_v62  ;;  %v2476_v62 = vld [vmem:[#allocation16 + $0x40] sm:$0xff]  }
 0x4a3   : > { %v1059_v4 = vadd.f32 1e-05, %v1055_v63  ;;  %v2477_v63 = vld [vmem:[#allocation16 + $0xc0] sm:$0xff]  }
 0x4a4   : > { %v1050_v5 = vpop.xlane.xlu1 %1049 }
 0x4a5   : > { %2496 = vrsqrt.f32 %v1059_v4  ;;  %v1056_v6 = vmul.f32 0.0078125, %v1050_v5  ;;  %v2478_v4 = vld [vmem:[#allocation16] sm:$0xff]  }
 0x4a6   : > { %v2479_v5 = vld [vmem:[#allocation16 + $0x80] sm:$0xff]  }
 0x4a7   : > { %v1060_v7 = vadd.f32 1e-05, %v1056_v6  ;;  %v1127_v6 = vlaneseq }
 0x4a8   : > { %v1052_v8 = vpop.xlane.xlu0 %1051 }
 0x4a9   : > { %2498 = vrsqrt.f32 %v1060_v7  ;;  %v1057_v9 = vmul.f32 0.0078125, %v1052_v8  ;;  %v1128_v7 = vshrl.u32 %v1127_v6, 7 }
 0x4ab   : > { %v1061_v10 = vadd.f32 1e-05, %v1057_v9  ;;  %v1129_v8 = vsub.s32 0, %v1128_v7  ;;  %v1137_v9 = vsub.s32 2, %v1128_v7 }
 0x4ac   : > { %v1054_v11 = vpop.xlane.xlu1 %1053 }
 0x4ad   : > { %2500 = vrsqrt.f32 %v1061_v10  ;;  %v1058_v12 = vmul.f32 0.0078125, %v1054_v11  ;;  %v1125_v10 = vld [vmem:[%s3385_s10] sm:$0xf]  ;;  %v1133_v11 = vsub.s32 1, %v1128_v7 }
 0x4af   : > { %v1062_v13 = vadd.f32 1e-05, %v1058_v12  ;;  %v1141_v12 = vsub.s32 3, %v1128_v7 }
 0x4b1   : > { %2502 = vrsqrt.f32 %v1062_v13  ;;  %v1130_v13 = vrot.slane %v1125_v10, %v1129_v8 }
 0x4b2   : > { %v2497_v14 = vpop.eup %2496 }
 0x4b3   : > { %v1067_v15 = vmul.f32 %v2497_v14, %v3232_v18  ;;  %v1138_v14 = vrot.slane %v1125_v10, %v1137_v9 }
 0x4b5   : > { %v1077_v19 = vmul.f32 %v2068_v16, %v1067_v15 }
 0x4b6   : > { %v2499_v1 = vpop.eup %2498 }
 0x4b7   : > { %v1068_v17 = vmul.f32 %v2499_v1, %v3237_v22  ;;  %v1087_v24 = vadd.f32 %v2069_v3, %v1077_v19  ;;  %v1134_v1 = vrot.slane %v1125_v10, %v1133_v11 }
 0x4b9   : > { %v1078_v21 = vmul.f32 %v2068_v16, %v1068_v17  ;;  %v1142_v17 = vrot.slane %v1125_v10, %v1141_v12 }
 0x4ba   : > { %v2501_v23 = vpop.eup %2500 }
 0x4bb   : > { %v1088_v25 = vadd.f32 %v2069_v3, %v1078_v21  ;;  %v1069_v27 = vmul.f32 %v2501_v23, %v3242_v26  ;;  %v2452_v26 = vld [vmem:[#allocation16 + $0x70] sm:$0xff]  }
 0x4bd   : > { %v1091_v28 = vpack.c.bf16 %v1088_v25, %v1087_v24  ;;  %v1079_v31 = vmul.f32 %v2068_v16, %v1069_v27 }
 0x4be   : > { %v2503_v29 = vpop.eup %2502 }
 0x4bf   : > { %1340 = vmatmul.mubr.bf16.vlgmr.msra.gmra.mxu0 %v1091_v28  ;;  %1393 = vmatmul.mubr.bf16.vlgmr.msra.gmra.mxu1 %v1091_v28  ;;  %v1070_v18 = vmul.f32 %v2503_v29, %v3247_v30  ;;  %v1089_v32 = vadd.f32 %v2069_v3, %v1079_v31  ;;  %v2454_v30 = vld [vmem:[#allocation16 + $0x30] sm:$0xff]  }
 0x4c0   : > { %1349 = vmatprep.mubr.bf16.mxu0 %v2871_v58  ;;  %1402 = vmatprep.mubr.bf16.mxu1 %v2871_v58  ;;  %v2473_v58 = vld [vmem:[#allocation16 + $0xc8] sm:$0xff]  }
 0x4c1   : > { %v1080_v22 = vmul.f32 %v2068_v16, %v1070_v18  ;;  %2159 = vmatpush3.bf16.msra.mxu0 %v2450_v37  ;;  %2187 = vmatpush3.bf16.msra.mxu1 %v2451_v38 }
 0x4c2   : > { %2160 = vmatprep.subr.bf16.mxu0 %v2452_v26  ;;  %2188 = vmatprep.subr.bf16.mxu1 %v2453_v39 }
 0x4c3   : > { %v1090_v33 = vadd.f32 %v2069_v3, %v1080_v22 }
 0x4c5   : > { %v1092_v34 = vpack.c.bf16 %v1090_v33, %v1089_v32  ;;  %2161 = vmatpush3.bf16.msra.mxu0 %v2454_v30  ;;  %2189 = vmatpush3.bf16.msra.mxu1 %v2455_v40 }
 0x4c6   : > { %2162 = vmatprep.subr.bf16.mxu0 %v2456_v41  ;;  %2190 = vmatprep.subr.bf16.mxu1 %v2457_v42 }
 0x4c7   : > { %1350 = vmatmul.mubr.bf16.gmra.mxu0 %v1092_v34  ;;  %1403 = vmatmul.mubr.bf16.gmra.mxu1 %v1092_v34 }
 0x4c9   : > { %2163 = vmatpush3.bf16.msra.mxu0 %v2458_v43  ;;  %2191 = vmatpush3.bf16.msra.mxu1 %v2459_v44 }
 0x4ca   : > { %2164 = vmatprep.subr.bf16.mxu0 %v2460_v45  ;;  %2192 = vmatprep.subr.bf16.mxu1 %v2461_v46 }
 0x4cd   : > { %2165 = vmatpush3.bf16.msra.mxu0 %v2462_v47  ;;  %2193 = vmatpush3.bf16.msra.mxu1 %v2463_v48 }
 0x4ce   : > { %2166 = vmatprep.subr.bf16.mxu0 %v2464_v49  ;;  %2194 = vmatprep.subr.bf16.mxu1 %v2465_v50 }
 0x4d1   : > { %2167 = vmatpush3.bf16.msra.mxu0 %v2466_v51  ;;  %2195 = vmatpush3.bf16.msra.mxu1 %v2467_v52 }
 0x4d2   : > { %2168 = vmatprep.subr.bf16.mxu0 %v2468_v53  ;;  %2196 = vmatprep.subr.bf16.mxu1 %v2469_v54 }
 0x4d5   : > { %2169 = vmatpush3.bf16.msra.mxu0 %v2470_v56  ;;  %2197 = vmatpush3.bf16.msra.mxu1 %v2471_v20 }
 0x4d6   : > { %2170 = vmatprep.subr.bf16.mxu0 %v2472_v57  ;;  %2198 = vmatprep.subr.bf16.mxu1 %v2473_v58 }
 0x4d9   : > { %2171 = vmatpush3.bf16.msra.mxu0 %v2474_v59  ;;  %2199 = vmatpush3.bf16.msra.mxu1 %v2475_v61 }
 0x4da   : > { %2172 = vmatprep.subr.bf16.mxu0 %v2476_v62  ;;  %2200 = vmatprep.subr.bf16.mxu1 %v2477_v63 }
 0x4dd   : > { %2173 = vmatpush3.bf16.msra.mxu0 %v2478_v4  ;;  %2201 = vmatpush3.bf16.msra.mxu1 %v2479_v5 }
 0x57f   : > { %v1341_v15 = vpop.f32.mrf.mxu0  ;;  %v1394_v16 = vpop.f32.mrf.mxu1 }
 0x580   : > { %v3261_v19 = vadd.f32 %v1341_v15, %v1130_v13  ;;  %v3263_v3 = vadd.f32 %v1394_v16, %v1138_v14 }
 0x581   : > { %v1343_v21 = vpop.f32.mrf.mxu0  ;;  %v1396_v23 = vpop.f32.mrf.mxu1 }
 0x582   : > { %v1429_v24 = vmul.f32 0.70710677, %v3261_v19  ;;  %v1431_v25 = vmul.f32 0.70710677, %v3263_v3  ;;  %v1344_v27 = vadd.f32 %v1343_v21, %v1134_v1  ;;  %v3267_v28 = vadd.f32 %v1396_v23, %v1142_v17 }
 0x583   : > { %v1345_v29 = vpop.f32.mrf.mxu0  ;;  %v1398_v18 = vpop.f32.mrf.mxu1  ;;  %v1413_v11 = vmul.f32 0.5, %v3261_v19 }
 0x584   : > { %v3269_v31 = vadd.f32 %v1345_v29, %v1130_v13  ;;  %v3271_v22 = vadd.f32 %v1398_v18, %v1138_v14  ;;  %2504 = verf.f32 %v1429_v24  ;;  %v1430_v32 = vmul.f32 0.70710677, %v1344_v27 }
 0x585   : > { %v1347_v33 = vpop.f32.mrf.mxu0  ;;  %v1400_v34 = vpop.f32.mrf.mxu1  ;;  %2506 = verf.f32 %v1431_v25  ;;  %v1432_v35 = vmul.f32 0.70710677, %v3267_v28  ;;  %v1414_v12 = vmul.f32 0.5, %v1344_v27 }
 0x586   : > { %v1433_v36 = vmul.f32 0.70710677, %v3269_v31  ;;  %2508 = verf.f32 %v1430_v32  ;;  %v1435_v37 = vmul.f32 0.70710677, %v3271_v22  ;;  %v1348_v38 = vadd.f32 %v1347_v33, %v1134_v1 }
 0x587   : > { %v3276_v26 = vadd.f32 %v1400_v34, %v1142_v17  ;;  %v1351_v39 = vpop.f32.mrf.mxu0  ;;  %v1404_v30 = vpop.f32.mrf.mxu1  ;;  %2510 = verf.f32 %v1432_v35  ;;  %v1419_v25 = vmul.f32 0.5, %v3271_v22  ;;  %v1416_v33 = vmul.f32 0.5, %v3267_v28 }
 0x588   : > { %v3278_v40 = vadd.f32 %v1351_v39, %v1130_v13  ;;  %v3280_v41 = vadd.f32 %v1404_v30, %v1138_v14  ;;  %2512 = verf.f32 %v1433_v36  ;;  %v1434_v42 = vmul.f32 0.70710677, %v1348_v38 }
 0x589   : > { %v1353_v43 = vpop.f32.mrf.mxu0  ;;  %v1406_v44 = vpop.f32.mrf.mxu1  ;;  %2514 = verf.f32 %v1435_v37  ;;  %v1436_v45 = vmul.f32 0.70710677, %v3276_v26  ;;  %v1418_v29 = vmul.f32 0.5, %v1348_v38  ;;  %v1420_v19 = vmul.f32 0.5, %v3276_v26 }
 0x58a   : > { %v1437_v46 = vmul.f32 0.70710677, %v3278_v40  ;;  %2516 = verf.f32 %v1434_v42  ;;  %v1439_v47 = vmul.f32 0.70710677, %v3280_v41  ;;  %v3285_v48 = vadd.f32 %v1353_v43, %v1134_v1 }
 0x58b   : > { %v1355_v49 = vpop.f32.mrf.mxu0  ;;  %v1408_v50 = vpop.f32.mrf.mxu1  ;;  %2518 = verf.f32 %v1436_v45  ;;  %v3287_v51 = vadd.f32 %v1406_v44, %v1142_v17  ;;  %v1415_v36 = vmul.f32 0.5, %v3263_v3 }
 0x58c   : > { %v3289_v52 = vadd.f32 %v1355_v49, %v1130_v13  ;;  %v3291_v53 = vadd.f32 %v1408_v50, %v1138_v14  ;;  %2520 = verf.f32 %v1437_v46  ;;  %v1438_v54 = vmul.f32 0.70710677, %v3285_v48 }
 0x58d   : > { %v1357_v56 = vpop.f32.mrf.mxu0  ;;  %v1410_v20 = vpop.f32.mrf.mxu1  ;;  %2522 = verf.f32 %v1439_v47  ;;  %v1440_v57 = vmul.f32 0.70710677, %v3287_v51 }
 0x58e   : > { %2524 = verf.f32 %v1438_v54  ;;  %v1441_v58 = vmul.f32 0.70710677, %v3289_v52  ;;  %v1443_v59 = vmul.f32 0.70710677, %v3291_v53  ;;  %v3297_v61 = vadd.f32 %v1357_v56, %v1134_v1 }
 0x58f   : > { %2526 = verf.f32 %v1440_v57  ;;  %v3299_v62 = vadd.f32 %v1410_v20, %v1142_v17  ;;  %v1417_v17 = vmul.f32 0.5, %v3269_v31  ;;  %v1421_v54 = vmul.f32 0.5, %v3278_v40 }
 0x590   : > { %2528 = verf.f32 %v1441_v58  ;;  %v1442_v4 = vmul.f32 0.70710677, %v3297_v61  ;;  %v1422_v58 = vmul.f32 0.5, %v3285_v48  ;;  %v1424_v40 = vmul.f32 0.5, %v3287_v51 }
 0x591   : > { %v2505_v63 = vpop.eup %2504  ;;  %2530 = verf.f32 %v1443_v59  ;;  %v1444_v6 = vmul.f32 0.70710677, %v3299_v62 }
 0x592   : > { %v2507_v5 = vpop.eup %2506  ;;  %2532 = verf.f32 %v1442_v4  ;;  %v1461_v16 = vadd.f32 1.0, %v2505_v63  ;;  %v1425_v63 = vmul.f32 0.5, %v3289_v52 }
 0x593   : > { %v2509_v7 = vpop.eup %2508  ;;  %2534 = verf.f32 %v1444_v6  ;;  %v1463_v24 = vadd.f32 1.0, %v2507_v5  ;;  %v1427_v6 = vmul.f32 0.5, %v3291_v53 }
 0x594   : > { %v2511_v8 = vpop.eup %2510  ;;  %v1462_v13 = vadd.f32 1.0, %v2509_v7  ;;  %v1477_v42 = vmul.f32 %v1461_v16, %v1413_v11  ;;  %v1426_v7 = vmul.f32 0.5, %v3297_v61 }
 0x595   : > { %v2513_v9 = vpop.eup %2512  ;;  %v1464_v1 = vadd.f32 1.0, %v2511_v8  ;;  %v1479_v38 = vmul.f32 %v1463_v24, %v1415_v36 }
 0x596   : > { %v2515_v10 = vpop.eup %2514  ;;  %v1465_v14 = vadd.f32 1.0, %v2513_v9  ;;  %v1478_v37 = vmul.f32 %v1462_v13, %v1414_v12  ;;  %v1423_v12 = vmul.f32 0.5, %v3280_v41  ;;  %v2102_v41 = vld [vmem:[%s3387_s12] ss:$0 sm:$0xff] }
 0x597   : > { %v2517_v15 = vpop.eup %2516  ;;  %v1467_v21 = vadd.f32 1.0, %v2515_v10  ;;  %v1480_v43 = vmul.f32 %v1464_v1, %v1416_v33  ;;  %v1428_v10 = vmul.f32 0.5, %v3299_v62 }
 0x598   : > { %v2519_v23 = vpop.eup %2518  ;;  %v1466_v18 = vadd.f32 1.0, %v2517_v15  ;;  %v1481_v34 = vmul.f32 %v1465_v14, %v1417_v17 }
 0x599   : > { %v2521_v32 = vpop.eup %2520  ;;  %v1468_v27 = vadd.f32 1.0, %v2519_v23  ;;  %v1483_v39 = vmul.f32 %v1467_v21, %v1419_v25 }
 0x59a   : > { %v2523_v35 = vpop.eup %2522  ;;  %v1482_v31 = vmul.f32 %v1466_v18, %v1418_v29  ;;  %v1493_v47 = vpack.c.bf16 %v1481_v34, %v1477_v42  ;;  %v1469_v57 = vadd.f32 1.0, %v2521_v32 }
 0x59b   : > { %v2525_v30 = vpop.eup %2524  ;;  %v1484_v44 = vmul.f32 %v1468_v27, %v1420_v19  ;;  %v1495_v50 = vpack.c.bf16 %v1483_v39, %v1479_v38  ;;  %v1471_v5 = vadd.f32 1.0, %v2523_v35 }
 0x59c   : > { %v2527_v22 = vpop.eup %2526  ;;  %v1494_v45 = vpack.c.bf16 %v1482_v31, %v1478_v37  ;;  %v1470_v3 = vadd.f32 1.0, %v2525_v30  ;;  %v1485_v52 = vmul.f32 %v1469_v57, %v1421_v54 }
 0x59d   : > { %v2529_v46 = vpop.eup %2528  ;;  %v1496_v28 = vpack.c.bf16 %v1484_v44, %v1480_v43  ;;  %v1472_v59 = vadd.f32 1.0, %v2527_v22  ;;  %v1487_v1 = vmul.f32 %v1471_v5, %v1423_v12 }
 0x59e   : > { %v2531_v49 = vpop.eup %2530  ;;  %v1473_v26 = vadd.f32 1.0, %v2529_v46  ;;  %1796 = vmatprep.mubr.bf16.mxu0 %v1494_v45  ;;  %v1486_v48 = vmul.f32 %v1470_v3, %v1422_v58 }
 0x59f   : > { %v1475_v56 = vadd.f32 1.0, %v2531_v49  ;;  %1845 = vmatprep.mubr.bf16.mxu1 %v1496_v28  ;;  %1797 = vmatmul.mubr.bf16.vlgmr.msra.gmra.mxu0 %v1493_v47  ;;  %v2533_v20 = vpop.eup %2532  ;;  %v1488_v15 = vmul.f32 %v1472_v59, %v1424_v40 }
 0x5a0   : > { %1846 = vmatmul.mubr.bf16.vlgmr.msra.gmra.mxu1 %v1495_v50  ;;  %v2535_v4 = vpop.eup %2534  ;;  %v1474_v8 = vadd.f32 1.0, %v2533_v20  ;;  %v1489_v9 = vmul.f32 %v1473_v26, %v1425_v63 }
 0x5a1   : > { %v1476_v11 = vadd.f32 1.0, %v2535_v4  ;;  %v1491_v13 = vmul.f32 %v1475_v56, %v1427_v6 }
 0x5a2   : > { %v1490_v14 = vmul.f32 %v1474_v8, %v1426_v7  ;;  %v1497_v21 = vpack.c.bf16 %v1489_v9, %v1485_v52 }
 0x5a3   : > { %v1492_v16 = vmul.f32 %v1476_v11, %v1428_v10  ;;  %v1499_v61 = vpack.c.bf16 %v1491_v13, %v1487_v1 }
 0x5a4   : > { %v1498_v17 = vpack.c.bf16 %v1490_v14, %v1486_v48 }
 0x5a5   : > { %v1500_v53 = vpack.c.bf16 %v1492_v16, %v1488_v15 }
 0x5a6   : > { %1804 = vmatprep.mubr.bf16.mxu0 %v1498_v17 }
 0x5a7   : > { %1853 = vmatprep.mubr.bf16.mxu1 %v1500_v53  ;;  %1805 = vmatmul.mubr.bf16.gmra.mxu0 %v1497_v21 }
 0x5a8   : > { %1854 = vmatmul.mubr.bf16.gmra.mxu1 %v1499_v61 }
 0x65f   : > { %v2174_v51 = vpop.f32.mrf.mxu0 }
 0x660   : > { %v2202_v62 = vpop.f32.mrf.mxu1 }
 0x661   : > { %v2175_v23 = vpop.f32.mrf.mxu0 }
 0x662   : > { %v2176_v24 = vadd.f32 %v2175_v23, %v2174_v51  ;;  %v2203_v25 = vpop.f32.mrf.mxu1 }
 0x663   : > { %v2177_v29 = vpop.f32.mrf.mxu0  ;;  %v2204_v32 = vadd.f32 %v2203_v25, %v2202_v62 }
 0x664   : > { %v1799_v18 = vadd.f32 %v2176_v24, %v2102_v41  ;;  %v2205_v33 = vpop.f32.mrf.mxu1 }
 0x665   : > { %v2178_v34 = vpop.f32.mrf.mxu0 }
 0x666   : > { %v1848_v19 = vadd.f32 %v2204_v32, %v1799_v18  ;;  %v2179_v27 = vadd.f32 %v2178_v34, %v2177_v29  ;;  %v2206_v35 = vpop.f32.mrf.mxu1 }
 0x667   : > { %v2207_v39 = vadd.f32 %v2206_v35, %v2205_v33  ;;  %v2180_v31 = vpop.f32.mrf.mxu0 }
 0x668   : > { %v1862_v36 = vadd.f32 %v1848_v19, %v3216_v55  ;;  %v1802_v37 = vadd.f32 %v2179_v27, %v2102_v41  ;;  %v2208_v30 = vpop.f32.mrf.mxu1 }
 0x669   : > { %v2181_v43 = vpop.f32.mrf.mxu0 }
 0x66a   : > { %1866 = vst [vmem:[%s562_s29] sm:$0xff] %v1862_v36  ;;  %v1851_v42 = vadd.f32 %v2207_v39, %v1802_v37  ;;  %v2182_v44 = vadd.f32 %v2181_v43, %v2180_v31  ;;  %v2209_v22 = vpop.f32.mrf.mxu1 }
 0x66b   : > { %v2183_v45 = vpop.f32.mrf.mxu0  ;;  %v2210_v47 = vadd.f32 %v2209_v22, %v2208_v30 }
 0x66c   : > { %v1863_v38 = vadd.f32 %v1851_v42, %v3220_v60  ;;  %v1807_v46 = vadd.f32 %v2182_v44, %v2102_v41  ;;  %v2211_v28 = vpop.f32.mrf.mxu1 }
 0x66d   : > { %v2184_v55 = vpop.f32.mrf.mxu0 }
 0x66e   : > { %1867 = vst [vmem:[%s562_s29 + $0x8] sm:$0xff] %v1863_v38  ;;  %v1856_v49 = vadd.f32 %v2210_v47, %v1807_v46  ;;  %v2185_v50 = vadd.f32 %v2184_v55, %v2183_v45  ;;  %v2212_v26 = vpop.f32.mrf.mxu1 }
 0x66f   : > { %v2213_v56 = vadd.f32 %v2212_v26, %v2211_v28 }
 0x670   : > { %v1864_v54 = vadd.f32 %v1856_v49, %v3224_v0  ;;  %v1810_v3 = vadd.f32 %v2185_v50, %v2102_v41 }
 0x672   : > { %1868 = vst [vmem:[%s562_s29 + $0x10] sm:$0xff] %v1864_v54  ;;  %v1859_v60 = vadd.f32 %v2213_v56, %v1810_v3 }
 0x674   : > { %v1865_v20 = vadd.f32 %v1859_v60, %v3228_v2 }
 0x676   : > { %1869 = vst [vmem:[%s562_s29 + $0x18] sm:$0xff] %v1865_v20 }
 0x677   : > { %2785 = shalt.err (!%p2782_p13)
}
 0x678   : > { %s2786_s18 = scalar_lea.hbm %s3331_s19, 512  ;;  %s2790_s21 = scalar_lea.hbm %s3388_s13, 1024 }
 0x679   : > { %p2787_p0 = scmp.ne.s32.totalorder %s3331_s19, %s2786_s18  ;;  %p2791_p5 = scmp.lt.s32.totalorder %s3331_s19, %s3388_s13 }
 0x67a   : > { %p2792_p8 = scmp.lt.s32.totalorder %s2790_s21, %s2786_s18 }
 0x67b   : > { %p2788_p4 = pnand %p2787_p0, %p3426_p11 }
 0x67c   : > { %p2793_p9 = por %p2792_p8, %p2791_p5 }
 0x67d   : > { %p2789_p2 = pneg %p2788_p4 }
 0x67f   : > { %p2794_p10 = pnand %p2793_p9, %p2789_p2 }
 0x681   : > { %2797 = shalt.err (!%p2794_p10)
}
 0x682   : > { %s2873_s9 = smov 128   ;;  %s2874_s17 = smov 8  }
 0x683   : > { %2296 = dma.vmem_to_hbm [thread:$0]  (%p3426_p11), %s3326_s7, 512, %s3331_s19, %s1871_s2, %s2873_s9, %s2873_s9, %s2874_s17  }
 0x684 PF: > { %s1899_s4 = sand.u32 1, %s2840_s25   ;;  %p3427_p1 = scmp.ne.s32.totalorder %s3414_s3, 0 }
 0x685   : > { %p3428_p3 = scmp.ge.s32.totalorder %s2852_s28, 2  ;;  %s1900_s14 = scalar_lea.sflag [#allocation4], %s1899_s4 }
 0x687   : > { %p2328_p7 = pnand %p3428_p3, %p3427_p1 }
 0x689   : > { %p2329_p6 = pneg %p2328_p7 }
 0x68b   : > { %2835 = dma.done.wait (%p2329_p6), %s1900_s14, 512  }
 0x68c   : > { %2837 = vsyncadd (%p2329_p6), %s1900_s14, 4294966784  ;;  %p30_p12 = scmp.ge.s32.totalorder %s3058_s16, 4   ;;  %s3429_s25 = smov %s2844_s26 }
 0x68d   : > { %s3430_s26 = smov %s2848_s27  ;;  %s3431_s27 = smov %s3069_s1 }
 0x68e   : > { %s3432_s28 = smov %s3058_s16  ;;  %32 = sbr.rel (!%p30_p12) target bundleno = 17 (0x11), region = 149 }
 0x693   :  { %1905 = vsyncpa [#allocation3], 1 }
 0x694   :  { %1907 = vsyncpa [#allocation3 + $0x1], 1 }
 0x695   :  { %1908 = vsyncpa [#allocation6], 1 }
 0x696   :  { %1909 = vsyncpa [#allocation9], 1 }
 0x697   :  { %1910 = vsyncpa [#allocation12], 1 }
 0x698   :  { %1911 = vsyncpa [#allocation15], 1 }
 0x699   :  { %1912 = vsyncpa [#allocation4], 1 }
 0x69a   :  { %1914 = vsyncpa [#allocation4 + $0x1], 1 }

</bundles_post_ra>
